<compile_context>
chip_gen: v5e
topology: v5e:2x2
jax: 0.10.0
libtpu: 0.0.40
codegen_flags: <defaults>
</compile_context>

<pallas_src>
import functools

import jax
import jax.numpy as jnp
from jax.experimental import pallas as pl
from jax.experimental.pallas import tpu as pltpu


def _round_down(x, m):
    return (x // m) * m


def _vmem_budget_bytes():
    """Per-generation scoped-VMEM budget: half of physical VMEM
    (v5e/v6e: 64 of 128 MiB, v7x: 32 of 64 MiB)."""
    try:
        cap = int(pltpu.get_tpu_info().vmem_capacity_bytes)
    except Exception:
        cap = 64 * 1024 * 1024  # conservative fallback (v7x physical size)
    return cap // 2


def _auto_tm(N, K, tn, x_itemsize, out_itemsize, w_itemsize, budget):
    """Largest row tile keeping double-buffered tiles under `budget`."""
    usable = (budget * 3) // 4                       # compiler headroom
    fixed = 2 * (K * tn * w_itemsize + tn * 4)       # weight + bias (2 buffers)
    per_row = (2 * K * x_itemsize                    # x tile   (2 buffers)
               + 2 * tn * out_itemsize               # out tile (2 buffers)
               + tn * 4)                             # f32 intermediate z
    tm = (usable - fixed) // max(per_row, 1)
    tm = max(8, min(1024, int(tm)))
    if tm >= N:
        return N                                     # block == full dim is legal
    return max(8, _round_down(tm, 8))


# ------------------------- single SineLayer kernel -------------------------

def _sine_layer_kernel(x_ref, w_ref, b_ref, o_ref, *, omega_0, is_last,
                       epilogue_in_bf16):
    # x_ref: (tm, K)  w_ref: (K, tn)  b_ref: (1, tn)  o_ref: (tm, tn)
    z = jnp.dot(x_ref[...], w_ref[...], preferred_element_type=jnp.float32)
    z = z + b_ref[...].astype(jnp.float32)
    if not is_last:
        if epilogue_in_bf16:
            # Halves VALU work for the sin polynomial; use on v6e/v7x only
            # (v5e has no bf16 VPU). Mild accuracy tradeoff, off by default.
            z = jnp.sin((omega_0 * z).astype(jnp.bfloat16)).astype(jnp.float32)
        else:
            z = jnp.sin(omega_0 * z)
    o_ref[...] = z.astype(o_ref.dtype)


def sine_layer(x, weight, bias, *, omega_0=30.0, is_last=False, tm=None,
               tn=None, compute_in_bf16=False, epilogue_in_bf16=False,
               out_dtype=None):
    """Single SIREN SineLayer forward. x: (N, K), weight: (out, K), bias: (out,)."""
    N, K = x.shape
    F = weight.shape[0]
    assert weight.shape == (F, K) and bias.shape == (F,)

    if out_dtype is None:
        out_dtype = x.dtype

    # One-time transpose in the wrapper -> MXU-native (K, F) orientation.
    w_t = jnp.transpose(weight)
    b2 = bias.reshape(1, F)
    if compute_in_bf16:                 # halves x/w HBM read traffic (opt-in)
        x = x.astype(jnp.bfloat16)
        w_t = w_t.astype(jnp.bfloat16)

    budget = _vmem_budget_bytes()

    # Output-column tile: full width when narrow (no padding, no post-slice),
    # else a lane-dense 512 tile (ragged last block masked by Pallas).
    if tn is None:
        tn = F if F <= 512 else 512
    tn = int(tn)

    if tm is None:
        tm = _auto_tm(N, K, tn, x.dtype.itemsize,
                      jnp.dtype(out_dtype).itemsize, w_t.dtype.itemsize, budget)
    else:
        tm = int(tm)
        tm = N if tm >= N else max(8, _round_down(tm, 8))

    kernel = functools.partial(
        _sine_layer_kernel,
        omega_0=float(omega_0),
        is_last=bool(is_last),
        epilogue_in_bf16=bool(epilogue_in_bf16),
    )

    return pl.pallas_call(
        kernel,
        out_shape=jax.ShapeDtypeStruct((N, F), out_dtype),
        grid_spec=pltpu.PrefetchScalarGridSpec(
            num_scalar_prefetch=0,
            grid=(pl.cdiv(N, tm), pl.cdiv(F, tn)),
            in_specs=[
                pl.BlockSpec((tm, K), lambda i, j: (i, 0)),
                pl.BlockSpec((K, tn), lambda i, j: (0, j)),
                pl.BlockSpec((1, tn), lambda i, j: (0, j)),
            ],
            out_specs=pl.BlockSpec((tm, tn), lambda i, j: (i, j)),
        ),
        compiler_params=pltpu.CompilerParams(
            dimension_semantics=("parallel", "parallel"),
            vmem_limit_bytes=budget,
        ),
    )(x, w_t, b2)


# --------------------- fused multi-layer SIREN kernel ----------------------

def _siren_mlp_kernel(*refs, num_layers, omega_0, last_is_linear):
    x_ref = refs[0]
    o_ref = refs[-1]
    wb = refs[1:-1]                       # (w1, b1, w2, b2, ..., wL, bL)
    h = x_ref[...].astype(jnp.float32)
    for l in range(num_layers):           # static unroll; activations stay on-chip
        w_ref = wb[2 * l]
        b_ref = wb[2 * l + 1]
        z = jnp.dot(h, w_ref[...], preferred_element_type=jnp.float32)
        z = z + b_ref[...].astype(jnp.float32)
        if l == num_layers - 1 and last_is_linear:
            h = z
        else:
            h = jnp.sin(omega_0 * z)
    o_ref[...] = h.astype(o_ref.dtype)


def siren_mlp(x, weights, biases, *, omega_0=30.0, last_is_linear=True,
              tm=None, out_dtype=None):
    """Fused SIREN forward: a stack of SineLayers in ONE pallas_call.

    All pre-transposed weights stay resident in VMEM and hidden activations
    never round-trip through HBM. weights[l]: (d_{l+1}, d_l), biases[l]: (d_{l+1},).
    """
    N, d_in = x.shape
    L = len(weights)
    dims = [d_in] + [int(w.shape[0]) for w in weights]
    for l in range(L):
        assert weights[l].shape == (dims[l + 1], dims[l])
        assert biases[l].shape == (dims[l + 1],)
    d_out = dims[-1]
    if out_dtype is None:
        out_dtype = x.dtype

    w_ts = [jnp.transpose(w) for w in weights]   # (d_l, d_{l+1})
    b2s = [b.reshape(1, -1) for b in biases]

    budget = _vmem_budget_bytes()
    usable = (budget * 3) // 4
    fixed = 2 * sum(int(w.size) * w.dtype.itemsize for w in w_ts)
    fixed += 2 * sum(int(b.size) * b.dtype.itemsize for b in b2s)
    max_w = max(dims)
    per_row = (2 * d_in * x.dtype.itemsize
               + 2 * d_out * jnp.dtype(out_dtype).itemsize
               + 3 * max_w * 4)                  # live f32 activations
    if tm is None:
        tm = (usable - fixed) // max(per_row, 1)
        tm = max(8, min(1024, int(tm)))
    else:
        tm = int(tm)
    tm = N if tm >= N else max(8, _round_down(tm, 8))

    in_specs = [pl.BlockSpec((tm, d_in), lambda i: (i, 0))]
    operands = [x]
    for l in range(L):
        in_specs.append(pl.BlockSpec((dims[l], dims[l + 1]), lambda i: (0, 0)))
        in_specs.append(pl.BlockSpec((1, dims[l + 1]), lambda i: (0, 0)))
        operands.append(w_ts[l])
        operands.append(b2s[l])

    kernel = functools.partial(
        _siren_mlp_kernel,
        num_layers=L,
        omega_0=float(omega_0),
        last_is_linear=bool(last_is_linear),
    )

    return pl.pallas_call(
        kernel,
        out_shape=jax.ShapeDtypeStruct((N, d_out), out_dtype),
        grid_spec=pltpu.PrefetchScalarGridSpec(
            num_scalar_prefetch=0,
            grid=(pl.cdiv(N, tm),),
            in_specs=in_specs,
            out_specs=pl.BlockSpec((tm, d_out), lambda i: (i, 0)),
        ),
        compiler_params=pltpu.CompilerParams(
            dimension_semantics=("parallel",),
            vmem_limit_bytes=budget,
        ),
    )(*operands)


# ----------------------------- parameter init ------------------------------

def init_sine_layer_params(key, in_features, out_features, *, is_first=False,
                           omega_0=30.0, weight_magnitude=6.0):
    """SineLayer.init_weights + default nn.Linear bias init (distribution-
    matched; does not replicate the torch RNG bit-stream)."""
    kw, kb = jax.random.split(key)
    if is_first:
        bound = 1.0 / in_features
    else:
        bound = float(jnp.sqrt(weight_magnitude / in_features) / omega_0)
    weight = jax.random.uniform(
        kw, (out_features, in_features), jnp.float32, -bound, bound)
    b_bound = 1.0 / float(jnp.sqrt(in_features))
    bias = jax.random.uniform(
        kb, (out_features,), jnp.float32, -b_bound, b_bound)
    return weight, bias


if __name__ == "__main__":
    key = jax.random.PRNGKey(0)
    k_x, k1, k2, k3, k4 = jax.random.split(key, 5)
    omega_0 = 30.0

    # N not a multiple of the row tile -> exercises the un-padded ragged path.
    N, d_in, hidden, d_out = 200, 2, 32, 1
    x = jax.random.uniform(k_x, (N, d_in), jnp.float32, -1.0, 1.0)

    w1, b1 = init_sine_layer_params(k1, d_in, hidden, is_first=True, omega_0=omega_0)
    w2, b2 = init_sine_layer_params(k2, hidden, hidden, omega_0=omega_0)
    w3, b3 = init_sine_layer_params(k3, hidden, hidden, omega_0=omega_0)
    w4, b4 = init_sine_layer_params(k4, hidden, d_out, omega_0=omega_0)

    # --- Single SineLayer (first layer, K=2), explicit tm=64 -> ragged rows. ---
    out1 = jax.block_until_ready(
        sine_layer(x, w1, b1, omega_0=omega_0, is_last=False, tm=64))
    ref1 = jnp.sin(omega_0 * (x @ w1.T + b1))
    assert out1.shape == (N, hidden)
    assert jnp.allclose(out1, ref1, atol=1e-4, rtol=1e-4)

    # --- Hidden layer 32->32 (auto tile) and is_last (plain linear) check. ---
    out2 = jax.block_until_ready(sine_layer(ref1, w2, b2, omega_0=omega_0))
    ref2 = jnp.sin(omega_0 * (ref1 @ w2.T + b2))
    assert jnp.allclose(out2, ref2, atol=1e-4, rtol=1e-4)

    out3 = jax.block_until_ready(
        sine_layer(ref2, w4, b4, omega_0=omega_0, is_last=True))
    ref3 = ref2 @ w4.T + b4
    assert out3.shape == (N, d_out)
    assert jnp.allclose(out3, ref3, atol=1e-4, rtol=1e-4)

    # --- Fused 4-layer SIREN: activations never touch HBM between layers. ---
    weights = [w1, w2, w3, w4]
    biases = [b1, b2, b3, b4]
    out_mlp = jax.block_until_ready(
        siren_mlp(x, weights, biases, omega_0=omega_0, last_is_linear=True))
    h = x
    for l in range(3):
        h = jnp.sin(omega_0 * (h @ weights[l].T + biases[l]))
    ref_mlp = h @ weights[3].T + biases[3]
    assert out_mlp.shape == (N, d_out)
    # sin(omega_0 * .) amplifies tiny matmul rounding differences across layers.
    assert jnp.allclose(out_mlp, ref_mlp, atol=5e-3, rtol=1e-3)

    print("KERNEL_OK")
</pallas_src>

<mosaic_0001>
module attributes {stable_mosaic.version = 11 : i64} {
  func.func @_sine_layer_kernel(%arg0: i32, %arg1: i32, %arg2: memref<64x2xf32, #tpu.memory_space<vmem>>, %arg3: memref<2x32xf32, #tpu.memory_space<vmem>>, %arg4: memref<1x32xf32, #tpu.memory_space<vmem>>, %arg5: memref<64x32xf32, #tpu.memory_space<vmem>>) attributes {dimension_semantics = [#tpu.dimension_semantics<parallel>, #tpu.dimension_semantics<parallel>], iteration_bounds = array<i64: 4, 1>, scalar_prefetch = 0 : i64, scratch_operands = 0 : i64, tpu.core_type = #tpu.core_type<tc>, window_params = [{transform_indices = @transform_0, window_bounds = array<i64: 64, 2>}, {transform_indices = @transform_1, window_bounds = array<i64: 2, 32>}, {transform_indices = @transform_2, window_bounds = array<i64: 1, 32>}, {transform_indices = @transform_3, window_bounds = array<i64: 64, 32>}]} {
    %c0 = arith.constant 0 : index
    %c0_0 = arith.constant 0 : index
    %0 = vector.load %arg2[%c0, %c0_0] : memref<64x2xf32, #tpu.memory_space<vmem>>, vector<64x2xf32>
    %c0_1 = arith.constant 0 : index
    %c0_2 = arith.constant 0 : index
    %1 = vector.load %arg3[%c0_1, %c0_2] : memref<2x32xf32, #tpu.memory_space<vmem>>, vector<2x32xf32>
    %cst = arith.constant dense<0.000000e+00> : vector<64x32xf32>
    %2 = tpu.matmul %0, %1, %cst {dimension_numbers = #tpu.dot_dimension_numbers<[1], [0], [0], [1], [0, 0, 1, 1], [], []>} : vector<64x2xf32>, vector<2x32xf32>, vector<64x32xf32> -> vector<64x32xf32>
    %c0_3 = arith.constant 0 : index
    %c0_4 = arith.constant 0 : index
    %3 = vector.load %arg4[%c0_3, %c0_4] : memref<1x32xf32, #tpu.memory_space<vmem>>, vector<1x32xf32>
    %4 = vector.broadcast %3 : vector<1x32xf32> to vector<64x32xf32>
    %5 = arith.addf %2, %4 : vector<64x32xf32>
    %cst_5 = arith.constant 3.000000e+01 : f32
    %6 = vector.broadcast %cst_5 : f32 to vector<64x32xf32>
    %7 = arith.mulf %6, %5 : vector<64x32xf32>
    %8 = math.sin %7 : vector<64x32xf32>
    %c0_6 = arith.constant 0 : index
    %c0_7 = arith.constant 0 : index
    %9 = vector.load %arg5[%c0_6, %c0_7] : memref<64x32xf32, #tpu.memory_space<vmem>>, vector<64x32xf32>
    tpu.vector_store %arg5[%c0_6, %c0_7], %8 {strides = array<i32>} : memref<64x32xf32, #tpu.memory_space<vmem>>, vector<64x32xf32>,
    return
  }
  func.func @transform_0(%arg0: i32, %arg1: i32) -> (i32, i32) {
    %c0_i32 = arith.constant 0 : i32
    %c0_i32_0 = arith.constant 0 : i32
    return %arg0, %c0_i32 : i32, i32
  }
  func.func @transform_1(%arg0: i32, %arg1: i32) -> (i32, i32) {
    %c0_i32 = arith.constant 0 : i32
    %c0_i32_0 = arith.constant 0 : i32
    return %c0_i32, %arg1 : i32, i32
  }
  func.func @transform_2(%arg0: i32, %arg1: i32) -> (i32, i32) {
    %c0_i32 = arith.constant 0 : i32
    %c0_i32_0 = arith.constant 0 : i32
    return %c0_i32, %arg1 : i32, i32
  }
  func.func @transform_3(%arg0: i32, %arg1: i32) -> (i32, i32) {
    %c0_i32 = arith.constant 0 : i32
    return %arg0, %arg1 : i32, i32
  }
}

</mosaic_0001>

<bundles_post_ra>
// kernel: tpu_custom_call.1
= control target key start
LH: loop header
LB: loop body
LE: loop exit
PB: predicated region body
PF: predicated region fallthrough
CT: control target
= control target key end

     0   :  { %s2169_s12 = smov 0   ;;  %s2171_s13 = smov 0   ;;  %s3167_s0 = inlined_call_operand.vmem [shape: f32[200,2], index: 0, kind: input, shape index: {}]   ;;  %s3168_s1 = inlined_call_operand.vmem [shape: f32[2,32], index: 1, kind: input, shape index: {}]   ;;  %s3169_s2 = inlined_call_operand.vmem [shape: f32[1,32], index: 2, kind: input, shape index: {}]   ;;  %s3170_s3 = inlined_call_operand.vmem [shape: f32[200,32], index: 3, kind: output, shape index: {}]  }
   0x1   :  { %s2173_s14 = smov 0   ;;  %s2175_s15 = smov 0  }
   0x2   :  { %s2177_s16 = smov 0  }
   0x3 LB: > { %s1859_s17 = sadd.s32 4294967295, %s2108_s16   ;;  %s25_s18 = sadd.s32 1, %s2104_s15  ;;  %s2108_s16 = sphi %s2177_s16, %s13_s16   ;;  %s2104_s15 = sphi %s2175_s15, %s3191_s15   ;;  %s2100_s14 = sphi %s2173_s14, %s3190_s14   ;;  %s2096_s13 = sphi %s2171_s13, %s3189_s13   ;;  %s2092_s12 = sphi %s2169_s12, %s3188_s12  }
   0x4   : > { %p27_p0 = scmp.ge.s32.totalorder %s25_s18, 4  ;;  %s112_s19 = sadd.s32 1, %s2096_s13 }
   0x5   : > { %p122_p1 = scmp.ne.s32.totalorder %s2096_s13, %s2092_s12  ;;  %p123_p2 = scmp.eq.s32.totalorder %s1859_s17, 3 }
   0x6   : > { %s3193_s18 = smov (%p27_p0, %s25_s18), 0  ;;  %p1865_p4 = scmp.ge.s32.totalorder %s2108_s16, 1 }
   0x7   : > { %p2201_p3 = por %p123_p2, %p122_p1  ;;  %s107_s21 = ssub.s32 %s2104_s15, %s3193_s18 }
   0x8   : > { %p177_p5 = scmp.lt.s32.totalorder %s2108_s16, 5  ;;  %p110_p6 = scmp.eq.s32.totalorder %s107_s21, 0 }
   0xa   : > { %p178_p7 = pnand %p1865_p4, %p177_p5 }
   0xb   : > { %s2210_s22 = scalar_select %p110_p6, %s2096_s13, %s112_s19  }
   0xc   : > { %181 = sbr.rel (%p178_p7) target bundleno = 538 (0x21a), region = 32  ;;  %s2216_s25 = sshll.u32 (!%p178_p7), %s2100_s14, 3 }
   0xd   : > { %p216_p8 = scmp.lt.s32.totalorder (!%p178_p7), %s2216_s25, 24  ;;  %s208_s6 = sand.u32 (!%p178_p7), 1, %s2092_s12  }
   0xe   : > { %s1866_s7 = sshll.u32 (!%p178_p7), %s208_s6, 6 }
   0xf   : > { %s2561_s8 = scalar_lea.vmem (!%p178_p7), [#allocation2], %s1866_s7  }
  0x11   : > { %v245_v0 = vld [vmem:[%s3168_s1] sm:$0x3]  ;;  %vm275_vm0 = vcmask 1041408   ;;  %s217_s26 = scalar_select %p216_p8, %s2216_s25, 24  ;;  %vm250_vm1 = vcmask 15360  }
  0x12   : > { %1869 = vmatpush.msk.msra.mxu0 %vm275_vm0, %v245_v0  ;;  %1922 = vmatpush.msk.msra.mxu1 %vm275_vm0, %v245_v0  ;;  %v2234_v9 = vld [vmem:[%s3169_s2] ss:$0 sm:$0xff]  ;;  %v2142_v40 = vmov 683565275   ;;  %v2143_v42 = vmov 2475754826  }
  0x13   : > { %1923 = vmatpush.msk.msra.mxu2 %vm275_vm0, %v245_v0  ;;  %1924 = vmatpush.msk.msra.mxu3 %vm275_vm0, %v245_v0  ;;  %s1868_s27 = sshll.u32 %s217_s26, 3  ;;  %v2144_v44 = vmov 2131351028   ;;  %v2145_v46 = vmov 2102212464   ;;  %s1585_s11 = ssub.s32 (%p2201_p3), 25, %s2216_s25 }
  0x14   : > { %s219_s30 = scalar_lea.vmem %s3167_s0, %s1868_s27  ;;  %v2146_v48 = vmov 920167782   ;;  %v2147_v57 = vmov 1326507024   ;;  %s1919_s12 = sshll.u32 (%p2201_p3), %s2100_s14, 6 }
  0x15   : > { %v237_v1 = vld [vmem:[%s219_s30] sm:$0xff]  ;;  %v239_v2 = vld [vmem:[%s219_s30 + $0x10] sm:$0xff]  ;;  %v238_v5 = vld [vmem:[%s219_s30 + $0x8] sm:$0xff]  ;;  %p1586_p9 = scmp.lt.s32.totalorder (%p2201_p3), %s1585_s11, 8  ;;  %s3108_s21 = scalar_lea.vmem (%p2201_p3), %s3170_s3, %s1919_s12  }
  0x16   : > { %v241_v3 = vld [vmem:[%s219_s30 + $0x20] sm:$0xff]  ;;  %1870 = vmatmul.msk.f32.vlgmr.msra.gmra.mxu0 %vm250_vm1, %v237_v1  ;;  %1872 = vmatmul.msk.f32.vlgmr.msra.gmra.mxu1 %vm250_vm1, %v239_v2  ;;  %v243_v4 = vld [vmem:[%s219_s30 + $0x30] sm:$0xff]  ;;  %v240_v6 = vld [vmem:[%s219_s30 + $0x18] sm:$0xff] }
  0x17   : > { %1874 = vmatmul.msk.f32.vlgmr.msra.gmra.mxu2 %vm250_vm1, %v241_v3  ;;  %1876 = vmatmul.msk.f32.vlgmr.msra.gmra.mxu3 %vm250_vm1, %v243_v4  ;;  %v242_v7 = vld [vmem:[%s219_s30 + $0x28] sm:$0xff]  ;;  %v244_v8 = vld [vmem:[%s219_s30 + $0x38] sm:$0xff] }
  0x1e   : > { %1871 = vmatmul.msk.f32.gmra.mxu0 %vm250_vm1, %v238_v5  ;;  %1873 = vmatmul.msk.f32.gmra.mxu1 %vm250_vm1, %v240_v6 }
  0x1f   : > { %1875 = vmatmul.msk.f32.gmra.mxu2 %vm250_vm1, %v242_v7  ;;  %1877 = vmatmul.msk.f32.gmra.mxu3 %vm250_vm1, %v244_v8 }
  0x93   : > { %v296_v10 = vpop.f32.mrf.mxu0  ;;  %v302_v11 = vpop.f32.mrf.mxu1 }
  0x94   : > { %v297_v12 = vadd.f32 %v2234_v9, %v296_v10  ;;  %v303_v13 = vadd.f32 %v2234_v9, %v302_v11 }
  0x96   : > { %v2238_v14 = vmul.f32 30.0, %v297_v12  ;;  %v2240_v15 = vmul.f32 30.0, %v303_v13 }
  0x98   : > { %v328_v16 = vand.u32 2147483647, %v2238_v14  ;;  %v331_v17 = vand.u32 2139095040, %v2238_v14  ;;  %v638_v18 = vand.u32 2147483647, %v2240_v15  ;;  %v641_v19 = vand.u32 2139095040, %v2240_v15 }
  0x9a   : > { %v332_v20 = vshrl.u32 %v331_v17, 23  ;;  %v335_v21 = vand.u32 8388607, %v328_v16  ;;  %v642_v22 = vshrl.u32 %v641_v19, 23  ;;  %v308_v24 = vpop.f32.mrf.mxu2  ;;  %v645_v27 = vand.u32 8388607, %v638_v18 }
  0x9b   : > { %v309_v30 = vadd.f32 %v2234_v9, %v308_v24 }
  0x9c   : > { %v1878_v23 = vadd.s32 4294967169, %v332_v20  ;;  %v336_v25 = vor.u32 8388608, %v335_v21  ;;  %v1884_v26 = vadd.s32 4294967169, %v642_v22  ;;  %v646_v33 = vor.u32 8388608, %v645_v27 }
  0x9d   : > { %v2257_v38 = vmul.f32 30.0, %v309_v30 }
  0x9e   : > { %v338_v28 = vadd.s32 1, %v1878_v23  ;;  %v648_v29 = vadd.s32 1, %v1884_v26  ;;  %v2251_v32 = vshll.u32 %v336_v25, 8  ;;  %v2265_v51 = vshll.u32 %v646_v33, 8 }
  0x9f   : > { %v951_v1 = vand.u32 2139095040, %v2257_v38 }
  0xa0   : > { %vm339_vm2 = vcmp.gt.s32.totalorder %v338_v28, 0  ;;  %vm649_vm3 = vcmp.gt.s32.totalorder %v648_v29, 0  ;;  %v377_v50 = vand.u32 65535, %v2251_v32  ;;  %v378_v55 = vshrl.u32 %v2251_v32, 16 }
  0xa1   : > { %v340_v31 = vsel %vm339_vm2, %v338_v28, 0  ;;  %v650_v35 = vsel %vm649_vm3, %v648_v29, 0  ;;  %v2309_v21 = vand.u32 65535, %v2265_v51 }
  0xa2   : > { %v342_v34 = vand.u32 31, %v340_v31  ;;  %v2253_v36 = vshrl.u32 %v340_v31, 5  ;;  %v2255_v37 = vand.u32 31, %v650_v35  ;;  %v2315_v28 = vshrl.u32 %v650_v35, 5 }
  0xa4   : > { %v343_v39 = vsub.s32 32, %v342_v34  ;;  %v345_v41 = vshll.u32 %v2142_v40, %v342_v34  ;;  %v348_v43 = vshll.u32 %v2143_v42, %v342_v34  ;;  %v351_v45 = vshll.u32 %v2144_v44, %v342_v34 }
  0xa5   : > { %v354_v47 = vshll.u32 %v2145_v46, %v342_v34  ;;  %v357_v49 = vshll.u32 %v2146_v48, %v342_v34  ;;  %vm360_vm4 = vcmp.lt.s32.totalorder %v2253_v36, 1  ;;  %vm363_vm5 = vcmp.lt.s32.totalorder %v2253_v36, 4 }
  0xa6   : > { %v346_v52 = vshrl.u32 %v2143_v42, %v343_v39  ;;  %v349_v53 = vshrl.u32 %v2144_v44, %v343_v39  ;;  %v352_v54 = vshrl.u32 %v2145_v46, %v343_v39  ;;  %v355_v56 = vshrl.u32 %v2146_v48, %v343_v39 }
  0xa7   : > { %v358_v58 = vshrl.u32 %v2147_v57, %v343_v39  ;;  %v2276_v62 = vsub.s32 32, %v2255_v37  ;;  %vm362_vm6 = vcmp.lt.s32.totalorder %v2253_v36, 3  ;;  %v344_v2 = vshrl.u32 %v2142_v40, %v343_v39 }
  0xa8   : > { %v347_v59 = vor.u32 %v346_v52, %v345_v41  ;;  %v350_v60 = vor.u32 %v349_v53, %v348_v43  ;;  %v353_v61 = vor.u32 %v352_v54, %v351_v45  ;;  %v356_v63 = vor.u32 %v355_v56, %v354_v47 }
  0xa9   : > { %v359_v0 = vor.u32 %v358_v58, %v357_v49  ;;  %vm361_vm7 = vcmp.lt.s32.totalorder %v2253_v36, 2  ;;  %v655_v7 = vshll.u32 %v2142_v40, %v2255_v37  ;;  %v658_v8 = vshll.u32 %v2143_v42, %v2255_v37 }
  0xaa   : > { %v368_v3 = vsel %vm360_vm4, %v347_v59, %v350_v60  ;;  %v372_v4 = vsel %vm360_vm4, %v350_v60, %v353_v61  ;;  %v369_v5 = vsel %vm363_vm5, %v356_v63, 920167782  ;;  %v365_v10 = vsel %vm363_vm5, %v353_v61, 2102212464 }
  0xab   : > { %v373_v6 = vsel %vm363_vm5, %v359_v0, 1326507024  ;;  %v370_v11 = vsel %vm362_vm6, %v353_v61, %v369_v5  ;;  %v656_v13 = vshrl.u32 %v2143_v42, %v2276_v62  ;;  %v659_v20 = vshrl.u32 %v2144_v44, %v2276_v62 }
  0xac   : > { %v374_v12 = vsel %vm362_vm6, %v356_v63, %v373_v6  ;;  %v371_v17 = vsel %vm361_vm7, %v368_v3, %v370_v11  ;;  %v364_v26 = vsel %vm360_vm4, %v344_v2, %v347_v59  ;;  %v366_v27 = vsel %vm362_vm6, %v350_v60, %v365_v10 }
  0xad   : > { %v375_v19 = vsel %vm361_vm7, %v372_v4, %v374_v12  ;;  %v401_v24 = vand.u32 65535, %v371_v17  ;;  %v402_v25 = vshrl.u32 %v371_v17, 16  ;;  %v2317_v29 = vor.u32 %v656_v13, %v655_v7 }
  0xae   : > { %v379_v22 = vand.u32 65535, %v375_v19  ;;  %v380_v23 = vshrl.u32 %v375_v19, 16  ;;  %v2319_v33 = vor.u32 %v659_v20, %v658_v8  ;;  %v661_v34 = vshll.u32 %v2144_v44, %v2255_v37 }
  0xaf   : > { %v404_v41 = vmul.u32 %v402_v25, %v377_v50  ;;  %v405_v43 = vmul.u32 %v401_v24, %v378_v55  ;;  %v662_v45 = vshrl.u32 %v2145_v46, %v2276_v62  ;;  %v403_v52 = vmul.u32 %v401_v24, %v377_v50 }
  0xb0   : > { %v382_v30 = vmul.u32 %v380_v23, %v377_v50  ;;  %v383_v31 = vmul.u32 %v379_v22, %v378_v55  ;;  %v381_v39 = vmul.u32 %v379_v22, %v377_v50  ;;  %v384_v47 = vmul.u32 %v380_v23, %v378_v55 }
  0xb1   : > { %v406_v35 = vmul.u32 %v402_v25, %v378_v55  ;;  %v407_v58 = vshll.u32 %v404_v41, 16  ;;  %v409_v60 = vshll.u32 %v405_v43, 16  ;;  %v664_v61 = vshll.u32 %v2145_v46, %v2255_v37 }
  0xb2   : > { %v385_v49 = vshll.u32 %v382_v30, 16  ;;  %v386_v53 = vshrl.u32 %v382_v30, 16  ;;  %v387_v54 = vshll.u32 %v383_v31, 16  ;;  %v388_v56 = vshrl.u32 %v383_v31, 16 }
  0xb3   : > { %v2148_v63 = vmov 0   ;;  %vm411_vm9 = vc.u32 %v403_v52, %v407_v58  ;;  %v413_v2 = vadd.s32 %v407_v58, %v403_v52  ;;  %v665_v3 = vshrl.u32 %v2146_v48, %v2276_v62 }
  0xb4   : > { %vm389_vm8 = vc.u32 %v381_v39, %v385_v49  ;;  %v391_v59 = vadd.s32 %v385_v49, %v381_v39  ;;  %v412_v55 = vsel %vm411_vm9, 1, %v2148_v63  ;;  %v667_v4 = vshll.u32 %v2146_v48, %v2255_v37 }
  0xb5   : > { %v390_v0 = vsel %vm389_vm8, 1, %v2148_v63  ;;  %v414_v6 = vadd.s32 %v412_v55, %v406_v35  ;;  %vm415_vm11 = vc.u32 %v413_v2, %v409_v60  ;;  %v663_v7 = vor.u32 %v662_v45, %v661_v34 }
  0xb6   : > { %v392_v50 = vadd.s32 %v390_v0, %v384_v47  ;;  %vm393_vm10 = vc.u32 %v391_v59, %v387_v54  ;;  %v416_v10 = vsel %vm415_vm11, 1, %v2148_v63  ;;  %v666_v11 = vor.u32 %v665_v3, %v664_v61 }
  0xb7   : > { %v394_v5 = vsel %vm393_vm10, 1, %v2148_v63  ;;  %v668_v12 = vshrl.u32 %v2147_v57, %v2276_v62  ;;  %v408_v13 = vshrl.u32 %v404_v41, 16  ;;  %v418_v17 = vadd.s32 %v416_v10, %v414_v6 }
  0xb8   : > { %v396_v8 = vadd.s32 %v394_v5, %v392_v50  ;;  %vm670_vm12 = vcmp.lt.s32.totalorder %v2315_v28, 1  ;;  %vm672_vm13 = vcmp.lt.s32.totalorder %v2315_v28, 3  ;;  %v410_v37 = vshrl.u32 %v405_v43, 16 }
  0xb9   : > { %v669_v20 = vor.u32 %v668_v12, %v667_v4  ;;  %vm673_vm14 = vcmp.lt.s32.totalorder %v2315_v28, 4  ;;  %v2340_v22 = vadd.s32 %v413_v2, %v409_v60  ;;  %v419_v23 = vadd.s32 %v418_v17, %v408_v13 }
  0xba   : > { %v397_v19 = vadd.s32 %v396_v8, %v386_v53  ;;  %v678_v24 = vsel %vm670_vm12, %v2317_v29, %v2319_v33  ;;  %v679_v25 = vsel %vm673_vm14, %v666_v11, 920167782  ;;  %vm671_vm15 = vcmp.lt.s32.totalorder %v2315_v28, 2 }
  0xbb   : > { %v680_v31 = vsel %vm672_vm13, %v663_v7, %v679_v25  ;;  %v682_v34 = vsel %vm670_vm12, %v2319_v33, %v663_v7  ;;  %v367_v39 = vsel %vm361_vm7, %v364_v26, %v366_v27  ;;  %v420_v41 = vadd.s32 %v419_v23, %v410_v37 }
  0xbc   : > { %v2348_v30 = vadd.s32 %v397_v19, %v388_v56  ;;  %v681_v43 = vsel %vm671_vm15, %v678_v24, %v680_v31  ;;  %v683_v45 = vsel %vm673_vm14, %v669_v20, 1326507024  ;;  %v688_v49 = vshrl.u32 %v2265_v51, 16 }
  0xbd   : > { %v684_v47 = vsel %vm672_vm13, %v666_v11, %v683_v45  ;;  %v711_v52 = vand.u32 65535, %v681_v43  ;;  %v424_v35 = vadd.s32 1, %v420_v41  ;;  %v712_v26 = vshrl.u32 %v681_v43, 16 }
  0xbe   : > { %vm423_vm0 = vc.u32 %v2348_v30, %v2340_v22  ;;  %v685_v36 = vsel %vm671_vm15, %v682_v34, %v684_v47  ;;  %v952_v27 = vshrl.u32 %v951_v1, 23  ;;  %v421_v53 = vmul.u32 %v2251_v32, %v367_v39 }
  0xbf   : > { %v689_v54 = vand.u32 65535, %v685_v36  ;;  %v690_v56 = vshrl.u32 %v685_v36, 16  ;;  %v948_v58 = vand.u32 2147483647, %v2257_v38  ;;  %v425_v59 = vsel %vm423_vm0, %v424_v35, %v420_v41 }
  0xc0   : > { %v654_v60 = vshrl.u32 %v2142_v40, %v2276_v62  ;;  %v714_v61 = vmul.u32 %v712_v26, %v2309_v21  ;;  %v715_v0 = vmul.u32 %v711_v52, %v688_v49  ;;  %v426_v2 = vadd.s32 %v425_v59, %v421_v53 }
  0xc1   : > { %v675_v3 = vsel %vm673_vm14, %v663_v7, 2102212464  ;;  %v692_v50 = vmul.u32 %v690_v56, %v2309_v21  ;;  %v693_v1 = vmul.u32 %v689_v54, %v688_v49  ;;  %v713_v32 = vmul.u32 %v711_v52, %v2309_v21 }
  0xc2   : > { %v716_v55 = vmul.u32 %v712_v26, %v688_v49  ;;  %v717_v4 = vshll.u32 %v714_v61, 16  ;;  %v1890_v5 = vadd.s32 4294967169, %v952_v27  ;;  %v427_v6 = vadd.s32 536870912, %v426_v2 }
  0xc3   : > { %v691_v8 = vmul.u32 %v689_v54, %v2309_v21  ;;  %v694_v10 = vmul.u32 %v690_v56, %v688_v49  ;;  %v695_v62 = vshll.u32 %v692_v50, 16  ;;  %v697_v11 = vshll.u32 %v693_v1, 16 }
  0xc4   : > { %v719_v12 = vshll.u32 %v715_v0, 16  ;;  %vm721_vm1 = vc.u32 %v713_v32, %v717_v4  ;;  %v723_v13 = vadd.s32 %v717_v4, %v713_v32  ;;  %v428_v17 = vshrl.u32 %v427_v6, 30 }
  0xc5   : > { %vm699_vm2 = vc.u32 %v691_v8, %v695_v62  ;;  %v701_v7 = vadd.s32 %v695_v62, %v691_v8  ;;  %v722_v19 = vsel %vm721_vm1, 1, %v2148_v63  ;;  %v955_v23 = vand.u32 8388607, %v948_v58 }
  0xc6   : > { %v700_v37 = vsel %vm699_vm2, 1, %v2148_v63  ;;  %v724_v20 = vadd.s32 %v722_v19, %v716_v55  ;;  %vm725_vm3 = vc.u32 %v723_v13, %v719_v12  ;;  %v429_v24 = vshll.u32 %v428_v17, 30 }
  0xc7   : > { %v674_v21 = vsel %vm670_vm12, %v654_v60, %v2317_v29  ;;  %v702_v25 = vadd.s32 %v700_v37, %v694_v10  ;;  %vm703_vm4 = vc.u32 %v701_v7, %v697_v11  ;;  %v676_v31 = vsel %vm672_vm13, %v2319_v33, %v675_v3 }
  0xc8   : > { %v704_v34 = vsel %vm703_vm4, 1, %v2148_v63  ;;  %v726_v39 = vsel %vm725_vm3, 1, %v2148_v63  ;;  %v958_v41 = vadd.s32 1, %v1890_v5  ;;  %v430_v43 = vsub.s32 %v426_v2, %v429_v24 }
  0xc9   : > { %v696_v45 = vshrl.u32 %v692_v50, 16  ;;  %v706_v47 = vadd.s32 %v704_v34, %v702_v25  ;;  %v728_v49 = vadd.s32 %v726_v39, %v724_v20  ;;  %vm330_vm5 = vcmp.lt.s32.totalorder %v2238_v14, 0 }
  0xca   : > { %v452_v52 = vsub.s32 4, %v428_v17  ;;  %v718_v35 = vshrl.u32 %v714_v61, 16  ;;  %vm959_vm6 = vcmp.gt.s32.totalorder %v958_v41, 0  ;;  %vm431_vm7 = vcmp.lt.s32.totalorder %v430_v43, 0 }
  0xcb   : > { %v432_v29 = vsub.s32 0, %v430_v43  ;;  %v698_v36 = vshrl.u32 %v693_v1, 16  ;;  %v707_v26 = vadd.s32 %v706_v47, %v696_v45  ;;  %v677_v33 = vsel %vm671_vm15, %v674_v21, %v676_v31 }
  0xcc   : > { %v720_v27 = vshrl.u32 %v715_v0, 16  ;;  %v729_v53 = vadd.s32 %v728_v49, %v718_v35  ;;  %v960_v54 = vsel %vm959_vm6, %v958_v41, 0  ;;  %v2398_v60 = vadd.s32 %v723_v13, %v719_v12 }
  0xcd   : > { %v433_v56 = vsel %vm431_vm7, %v432_v29, %v430_v43  ;;  %v2396_v59 = vadd.s32 %v707_v26, %v698_v36  ;;  %v956_v2 = vor.u32 8388608, %v955_v23  ;;  %v453_v61 = vsel %vm330_vm5, %v452_v52, %v428_v17 }
  0xce   : > { %v434_v3 = vclz %v433_v56  ;;  %v730_v50 = vadd.s32 %v729_v53, %v720_v27  ;;  %v962_v32 = vand.u32 31, %v960_v54  ;;  %vm2404_vm8 = vcmp.le.f32.partialorder %v328_v16, 0.7853982 }
  0xcf   : > { %vm733_vm9 = vc.u32 %v2396_v59, %v2398_v60  ;;  %v422_v4 = vadd.s32 %v2340_v22, %v2348_v30  ;;  %v455_v5 = vsel %vm2404_vm8, 0, %v453_v61  ;;  %v731_v6 = vmul.u32 %v2265_v51, %v677_v33  ;;  %v314_v61 = vpop.f32.mrf.mxu3 }
  0xd0   : > { %v1879_v0 = vadd.s32 4294967294, %v434_v3  ;;  %v734_v1 = vadd.s32 1, %v730_v50  ;;  %v2410_v55 = vsub.s32 32, %v962_v32  ;;  %v2417_v8 = vshrl.u32 %v960_v54, 5 }
  0xd1   : > { %v2419_v10 = vshll.u32 %v956_v2, 8  ;;  %v965_v17 = vshll.u32 %v2142_v40, %v962_v32  ;;  %v968_v51 = vshll.u32 %v2143_v42, %v962_v32  ;;  %v974_v37 = vshll.u32 %v2145_v46, %v962_v32 }
  0xd2   : > { %vm1880_vm10 = vcmp.lt.s32.totalorder %v1879_v0, 0  ;;  %v735_v16 = vsel %vm733_vm9, %v734_v1, %v730_v50  ;;  %v966_v12 = vshrl.u32 %v2143_v42, %v2410_v55  ;;  %v969_v13 = vshrl.u32 %v2144_v44, %v2410_v55 }
  0xd3   : > { %v437_v62 = vsel %vm1880_vm10, 0, %v1879_v0  ;;  %v736_v11 = vadd.s32 %v735_v16, %v731_v6  ;;  %v972_v19 = vshrl.u32 %v2145_v46, %v2410_v55  ;;  %v975_v20 = vshrl.u32 %v2146_v48, %v2410_v55 }
  0xd4   : > { %v438_v22 = vsub.s32 32, %v437_v62  ;;  %v442_v30 = vsub.s32 4294967266, %v437_v62  ;;  %v439_v23 = vshll.u32 %v430_v43, %v437_v62  ;;  %v978_v25 = vshrl.u32 %v2147_v57, %v2410_v55 }
  0xd5   : > { %v737_v7 = vadd.s32 536870912, %v736_v11  ;;  %v967_v34 = vor.u32 %v966_v12, %v965_v17  ;;  %v2434_v39 = vor.u32 %v969_v13, %v968_v51  ;;  %v971_v41 = vshll.u32 %v2144_v44, %v962_v32 }
  0xd6   : > { %v440_v24 = vshrl.u32 %v422_v4, %v438_v22  ;;  %v443_v21 = vadd.s32 127, %v442_v30  ;;  %v976_v49 = vor.u32 %v975_v20, %v974_v37  ;;  %v977_v52 = vshll.u32 %v2146_v48, %v962_v32 }
  0xd7   : > { %v738_v31 = vshrl.u32 %v737_v7, 30  ;;  %v472_v35 = vadd.s32 3, %v455_v5  ;;  %v973_v36 = vor.u32 %v972_v19, %v971_v41  ;;  %vm980_vm11 = vcmp.lt.s32.totalorder %v2417_v8, 1 }
  0xd8   : > { %v441_v45 = vor.u32 %v440_v24, %v439_v23  ;;  %v444_v47 = vshll.u32 %v443_v21, 23  ;;  %v979_v26 = vor.u32 %v978_v25, %v977_v52  ;;  %v997_v33 = vand.u32 65535, %v2419_v10 }
  0xd9   : > { %v739_v29 = vshll.u32 %v738_v31, 30  ;;  %vm640_vm12 = vcmp.lt.s32.totalorder %v2240_v15, 0  ;;  %vm983_vm13 = vcmp.lt.s32.totalorder %v2417_v8, 4  ;;  %v988_v53 = vsel %vm980_vm11, %v967_v34, %v2434_v39 }
  0xda   : > { %v445_v43 = vor.u32 4788187, %v444_v47  ;;  %v2448_v54 = vshrl.u32 %v2419_v10, 16  ;;  %v448_v2 = vcvt.s32.f32 %v441_v45  ;;  %vm982_vm14 = vcmp.lt.s32.totalorder %v2417_v8, 3 }
  0xdb   : > { %v2441_v27 = vsub.s32 %v736_v11, %v739_v29  ;;  %v989_v3 = vsel %vm983_vm13, %v976_v49, 920167782  ;;  %vm981_vm0 = vcmp.lt.s32.totalorder %v2417_v8, 2  ;;  %v992_v4 = vsel %vm980_vm11, %v2434_v39, %v973_v36 }
  0xdc   : > { %v446_v56 = vand.u32 2147483647, %v445_v43  ;;  %v990_v32 = vsel %vm982_vm14, %v973_v36, %v989_v3  ;;  %v993_v5 = vsel %vm983_vm13, %v979_v26, 1326507024  ;;  %v2465_v6 = vand.u32 3, %v472_v35 }
  0xdd   : > { %vm741_vm15 = vcmp.lt.s32.totalorder %v2441_v27, 0  ;;  %v742_v50 = vsub.s32 0, %v2441_v27  ;;  %v991_v1 = vsel %vm981_vm0, %v988_v53, %v990_v32  ;;  %v994_v62 = vsel %vm982_vm14, %v976_v49, %v993_v5 }
  0xde   : > { %v449_v0 = vmul.f32 %v448_v2, %v446_v56  ;;  %v2471_v11 = vadd.f32 %v2234_v9, %v314_v61  ;;  %v762_v22 = vsub.s32 4, %v738_v31  ;;  %v995_v30 = vsel %vm981_vm0, %v992_v4, %v994_v62 }
  0xdf   : > { %v743_v16 = vsel %vm741_vm15, %v742_v50, %v2441_v27  ;;  %v964_v17 = vshrl.u32 %v2142_v40, %v2410_v55  ;;  %v999_v51 = vand.u32 65535, %v995_v30  ;;  %v1021_v7 = vand.u32 65535, %v991_v1 }
  0xe0   : > { %v450_v12 = vxor.u32 2147483648, %v449_v0  ;;  %v744_v13 = vclz %v743_v16  ;;  %v1022_v19 = vshrl.u32 %v991_v1, 16  ;;  %v732_v20 = vadd.s32 %v2398_v60, %v2396_v59 }
  0xe1   : > { %v1000_v24 = vshrl.u32 %v995_v30, 16  ;;  %v2488_v25 = vsel %vm980_vm11, %v964_v17, %v967_v34  ;;  %v985_v55 = vsel %vm983_vm13, %v973_v36, 2102212464  ;;  %v2493_v41 = vmul.u32 %v999_v51, %v2448_v54 }
  0xe2   : > { %v451_v37 = vsel %vm330_vm5, %v450_v12, %v449_v0  ;;  %v1885_v23 = vadd.s32 4294967294, %v744_v13  ;;  %v2499_v60 = vsel %vm640_vm12, %v762_v22, %v738_v31  ;;  %v1001_v47 = vmul.u32 %v999_v51, %v997_v33 }
  0xe3   : > { %v2484_v21 = vsel %vm2404_vm8, %v2238_v14, %v451_v37  ;;  %v1002_v28 = vmul.u32 %v1000_v24, %v997_v33  ;;  %v1023_v49 = vmul.u32 %v1021_v7, %v997_v33  ;;  %v2501_v34 = vmul.u32 %v1022_v19, %v997_v33 }
  0xe4   : > { %v456_v59 = vmul.f32 %v2484_v21, %v2484_v21  ;;  %vm1886_vm1 = vcmp.lt.s32.totalorder %v1885_v23, 0  ;;  %v1004_v36 = vmul.u32 %v1000_v24, %v2448_v54  ;;  %v1007_v53 = vshll.u32 %v2493_v41, 16 }
  0xe5   : > { %v747_v45 = vsel %vm1886_vm1, 0, %v1885_v23  ;;  %v1005_v26 = vshll.u32 %v1002_v28, 16  ;;  %v2506_v56 = vmul.u32 %v1021_v7, %v2448_v54  ;;  %v1027_v32 = vshll.u32 %v2501_v34, 16 }
  0xe6   : > { %v457_v52 = vmul.f32 -0.001358992, %v456_v59  ;;  %v464_v35 = vmul.f32 -0.00019511016, %v456_v59  ;;  %v748_v29 = vsub.s32 32, %v747_v45  ;;  %v752_v43 = vsub.s32 4294967266, %v747_v45 }
  0xe7   : > { %v749_v3 = vshll.u32 %v2441_v27, %v747_v45  ;;  %vm1009_vm2 = vc.u32 %v1001_v47, %v1005_v26  ;;  %v1011_v33 = vadd.s32 %v1005_v26, %v1001_v47  ;;  %vm2512_vm3 = vcmp.le.f32.partialorder %v638_v18, 0.7853982 }
  0xe8   : > { %v458_v31 = vadd.f32 0.041655596, %v457_v52  ;;  %v465_v2 = vadd.f32 0.008332121, %v464_v35  ;;  %v750_v61 = vshrl.u32 %v732_v20, %v748_v29  ;;  %v753_v50 = vadd.s32 127, %v752_v43 }
  0xe9   : > { %v1006_v5 = vshrl.u32 %v1002_v28, 16  ;;  %v1010_v16 = vsel %vm1009_vm2, 1, %v2148_v63  ;;  %vm1013_vm4 = vc.u32 %v1011_v33, %v1007_v53  ;;  %vm478_vm5 = vcmp.eq.s32.totalorder %v2465_v6, 2 }
  0xea   : > { %v459_v0 = vmul.f32 %v458_v31, %v456_v59  ;;  %v466_v1 = vmul.f32 %v465_v2, %v456_v59  ;;  %v751_v62 = vor.u32 %v750_v61, %v749_v3  ;;  %v754_v12 = vshll.u32 %v753_v50, 23 }
  0xeb   : > { %v1012_v27 = vadd.s32 %v1010_v16, %v1004_v36  ;;  %v1014_v30 = vsel %vm1013_vm4, 1, %v2148_v63  ;;  %v1026_v17 = vmul.u32 %v1022_v19, %v2448_v54  ;;  %vm475_vm6 = vcmp.eq.s32.totalorder %v2465_v6, 0 }
  0xec   : > { %v460_v13 = vadd.f32 -0.4999988, %v459_v0  ;;  %v467_v22 = vadd.f32 -0.16666654, %v466_v1  ;;  %v755_v18 = vor.u32 4788187, %v754_v12  ;;  %vm1031_vm7 = vc.u32 %v1023_v49, %v1027_v32 }
  0xed   : > { %v1016_v51 = vadd.s32 %v1014_v30, %v1012_v27  ;;  %v1029_v7 = vshll.u32 %v2506_v56, 16  ;;  %vm474_vm8 = vcmp.lt.s32.totalorder %v2465_v6, 2  ;;  %vm1568_vm9 = vcmask 261120  }
  0xee   : > { %v461_v37 = vmul.f32 %v460_v13, %v456_v59  ;;  %v468_v20 = vmul.f32 %v467_v22, %v456_v59  ;;  %v1032_v23 = vsel %vm1031_vm7, 1, %v2148_v63  ;;  %v1033_v24 = vadd.s32 %v1027_v32, %v1023_v49  ;;  %v299_v32 = vpop.f32.mrf.mxu0 }
  0xef   : > { %vm471_vm10 = vweird.f32 %v2238_v14  ;;  %v756_v28 = vand.u32 2147483647, %v755_v18  ;;  %v758_v54 = vcvt.s32.f32 %v751_v62  ;;  %v1017_v19 = vadd.s32 %v1016_v51, %v1006_v5 }
  0xf0   : > { %v1034_v45 = vadd.s32 %v1032_v23, %v1026_v17  ;;  %v462_v47 = vadd.f32 1.0, %v461_v37  ;;  %v469_v52 = vadd.f32 1.0, %v468_v20  ;;  %v986_v35 = vsel %vm982_vm14, %v2434_v39, %v985_v55 }
  0xf1   : > { %vm1035_vm11 = vc.u32 %v1033_v24, %v1029_v7  ;;  %v759_v59 = vmul.f32 %v758_v54, %v756_v28  ;;  %v1008_v29 = vshrl.u32 %v2493_v41, 16  ;;  %v2532_v49 = vmul.f32 30.0, %v2471_v11 }
  0xf2   : > { %v1036_v36 = vsel %vm1035_vm11, 1, %v2148_v63  ;;  %v470_v43 = vmul.f32 %v469_v52, %v2484_v21  ;;  %v479_v26 = vxor.u32 2147483648, %v462_v47  ;;  %v1028_v53 = vshrl.u32 %v2501_v34, 16 }
  0xf3   : > { %v1038_v31 = vadd.s32 %v1036_v36, %v1034_v45  ;;  %v760_v2 = vxor.u32 2147483648, %v759_v59  ;;  %v765_v39 = vsel %vm2512_vm3, 0, %v2499_v60  ;;  %v1018_v55 = vadd.s32 %v1017_v19, %v1008_v29 }
  0xf4   : > { %v1258_v41 = vand.u32 2147483647, %v2532_v49  ;;  %v476_v3 = vxor.u32 2147483648, %v470_v43  ;;  %v987_v11 = vsel %vm981_vm0, %v2488_v25, %v986_v35  ;;  %v1030_v21 = vshrl.u32 %v2506_v56, 16 }
  0xf5   : > { %v1039_v61 = vadd.s32 %v1038_v31, %v1028_v53  ;;  %v480_v34 = vsel %vm478_vm5, %v479_v26, %v470_v43  ;;  %v761_v50 = vsel %vm640_vm12, %v760_v2, %v759_v59  ;;  %v1037_v33 = vadd.s32 %v1033_v24, %v1029_v7 }
  0xf6   : > { %v1261_v60 = vand.u32 2139095040, %v2532_v49  ;;  %v477_v0 = vsel %vm475_vm6, %v462_v47, %v476_v3  ;;  %v764_v8 = vsel %vm2512_vm3, %v2240_v15, %v761_v50  ;;  %v1265_v56 = vand.u32 8388607, %v1258_v41 }
  0xf7   : > { %v1040_v25 = vadd.s32 %v1039_v61, %v1030_v21  ;;  %v481_v1 = vsel %vm474_vm8, %v477_v0, %v480_v34  ;;  %v766_v5 = vmul.f32 %v764_v8, %v764_v8  ;;  %vm1043_vm12 = vc.u32 %v1018_v55, %v1037_v33 }
  0xf8   : > { %v1262_v16 = vshrl.u32 %v1261_v60, 23  ;;  %v482_v62 = vsel %vm471_vm10, nan, %v481_v1  ;;  %v782_v12 = vadd.s32 3, %v765_v39  ;;  %v300_v13 = vadd.f32 %v2234_v9, %v299_v32 }
  0xf9   : > { %v1044_v27 = vadd.s32 1, %v1040_v25  ;;  %1569 = vst.msk [vmem:[%s2561_s8] sm:$0xff] %vm1568_vm9, %v482_v62  ;;  %v767_v4 = vmul.f32 -0.001358992, %v766_v5  ;;  %v774_v22 = vmul.f32 -0.00019511016, %v766_v5  ;;  %v1041_v6 = vmul.u32 %v2419_v10, %v987_v11 }
  0xfa   : > { %v1896_v30 = vadd.s32 4294967169, %v1262_v16  ;;  %v1266_v18 = vor.u32 8388608, %v1265_v56  ;;  %v783_v20 = vand.u32 3, %v782_v12  ;;  %v2566_v23 = vmul.f32 30.0, %v300_v13 }
  0xfb   : > { %v1045_v17 = vsel %vm1043_vm12, %v1044_v27, %v1040_v25  ;;  %v768_v51 = vadd.f32 0.041655596, %v767_v4  ;;  %v775_v7 = vadd.f32 0.008332121, %v774_v22  ;;  %vm950_vm14 = vcmp.lt.s32.totalorder %v2257_v38, 0 }
  0xfc   : > { %v1046_v14 = vadd.s32 %v1045_v17, %v1041_v6  ;;  %v1268_v37 = vadd.s32 1, %v1896_v30  ;;  %v2568_v19 = vshll.u32 %v1266_v18, 8  ;;  %v483_v35 = vand.u32 2147483647, %v2566_v23 }
  0xfd   : > { %v769_v9 = vmul.f32 %v768_v51, %v766_v5  ;;  %v776_v24 = vmul.f32 %v775_v7, %v766_v5  ;;  %v486_v59 = vand.u32 2139095040, %v2566_v23  ;;  %vm784_vm15 = vcmp.lt.s32.totalorder %v783_v20, 2 }
  0xfe   : > { %v1047_v28 = vadd.s32 536870912, %v1046_v14  ;;  %vm1269_vm13 = vcmp.gt.s32.totalorder %v1268_v37, 0  ;;  %vm785_vm0 = vcmp.eq.s32.totalorder %v783_v20, 0  ;;  %vm781_vm1 = vweird.f32 %v2240_v15 }
  0xff   : > { %v1270_v54 = vsel %vm1269_vm13, %v1268_v37, 0  ;;  %v770_v45 = vadd.f32 -0.4999988, %v769_v9  ;;  %v777_v47 = vadd.f32 -0.16666654, %v776_v24  ;;  %vm788_vm2 = vcmp.eq.s32.totalorder %v783_v20, 2 }
 0x100   : > { %v1048_v10 = vshrl.u32 %v1047_v28, 30  ;;  %v1272_v52 = vand.u32 31, %v1270_v54  ;;  %v1042_v26 = vadd.s32 %v1037_v33, %v1018_v55  ;;  %v2575_v31 = vand.u32 65535, %v2568_v19 }
 0x101   : > { %v771_v29 = vmul.f32 %v770_v45, %v766_v5  ;;  %v778_v36 = vmul.f32 %v777_v47, %v766_v5  ;;  %vm2579_vm3 = vcmp.le.f32.partialorder %v948_v58, 0.7853982  ;;  %v2583_v61 = vshrl.u32 %v1270_v54, 5 }
 0x102   : > { %v1049_v43 = vshll.u32 %v1048_v10, 30  ;;  %v1273_v53 = vsub.s32 32, %v1272_v52  ;;  %v1072_v21 = vsub.s32 4, %v1048_v10  ;;  %v487_v50 = vshrl.u32 %v486_v59, 23 }
 0x103   : > { %v772_v2 = vadd.f32 1.0, %v771_v29  ;;  %v779_v39 = vadd.f32 1.0, %v778_v36  ;;  %v2588_v55 = vand.u32 8388607, %v483_v35  ;;  %v1275_v58 = vshll.u32 %v2142_v40, %v1272_v52 }
 0x104   : > { %v1050_v11 = vsub.s32 %v1046_v14, %v1049_v43  ;;  %v1276_v34 = vshrl.u32 %v2143_v42, %v1273_v53  ;;  %v1278_v0 = vshll.u32 %v2143_v42, %v1272_v52  ;;  %v1279_v25 = vshrl.u32 %v2144_v44, %v1273_v53 }
 0x105   : > { %v780_v33 = vmul.f32 %v779_v39, %v764_v8  ;;  %v789_v60 = vxor.u32 2147483648, %v772_v2  ;;  %v1282_v56 = vshrl.u32 %v2145_v46, %v1273_v53  ;;  %v1073_v16 = vsel %vm950_vm14, %v1072_v21, %v1048_v10 }
 0x106   : > { %vm1051_vm4 = vcmp.lt.s32.totalorder %v1050_v11, 0  ;;  %v1052_v32 = vsub.s32 0, %v1050_v11  ;;  %v1281_v62 = vshll.u32 %v2144_v44, %v1272_v52  ;;  %v1277_v27 = vor.u32 %v1276_v34, %v1275_v58 }
 0x107   : > { %v786_v1 = vxor.u32 2147483648, %v780_v33  ;;  %v790_v8 = vsel %vm788_vm2, %v789_v60, %v780_v33  ;;  %v1285_v13 = vshrl.u32 %v2146_v48, %v1273_v53  ;;  %v1284_v22 = vshll.u32 %v2145_v46, %v1272_v52 }
 0x108   : > { %v1053_v5 = vsel %vm1051_vm4, %v1052_v32, %v1050_v11  ;;  %v1287_v6 = vshll.u32 %v2146_v48, %v1272_v52  ;;  %v1288_v30 = vshrl.u32 %v2147_v57, %v1273_v53  ;;  %v1280_v51 = vor.u32 %v1279_v25, %v1278_v0 }
 0x109   : > { %v1054_v12 = vclz %v1053_v5  ;;  %v787_v4 = vsel %vm785_vm0, %v772_v2, %v786_v1  ;;  %v1283_v7 = vor.u32 %v1282_v56, %v1281_v62  ;;  %v1286_v37 = vor.u32 %v1285_v13, %v1284_v22 }
 0x10a   : > { %v791_v17 = vsel %vm784_vm15, %v787_v4, %v790_v8  ;;  %v1289_v9 = vor.u32 %v1288_v30, %v1287_v6  ;;  %v1881_v24 = vadd.s32 4294967169, %v487_v50  ;;  %v1075_v28 = vsel %vm2579_vm3, 0, %v1073_v16 }
 0x10b   : > { %v1891_v18 = vadd.s32 4294967294, %v1054_v12  ;;  %v792_v14 = vsel %vm781_vm1, nan, %v791_v17  ;;  %v1274_v54 = vshrl.u32 %v2142_v40, %v1273_v53  ;;  %vm1290_vm6 = vcmp.lt.s32.totalorder %v2583_v61, 1 }
 0x10c   : > { %1571 = vst.msk [vmem:[%s2561_s8 + $0x10] sm:$0xff] %vm1568_vm9, %v792_v14  ;;  %vm1291_vm7 = vcmp.lt.s32.totalorder %v2583_v61, 2  ;;  %vm1292_vm8 = vcmp.lt.s32.totalorder %v2583_v61, 3  ;;  %vm1293_vm10 = vcmp.lt.s32.totalorder %v2583_v61, 4  ;;  %v1298_v10 = vsel %vm1290_vm6, %v1277_v27, %v1280_v51 }
 0x10d   : > { %vm1892_vm5 = vcmp.lt.s32.totalorder %v1891_v18, 0  ;;  %v1295_v47 = vsel %vm1293_vm10, %v1283_v7, 2102212464  ;;  %v1299_v59 = vsel %vm1293_vm10, %v1286_v37, 920167782  ;;  %v1302_v29 = vsel %vm1290_vm6, %v1280_v51, %v1283_v7 }
 0x10e   : > { %v1057_v20 = vsel %vm1892_vm5, 0, %v1891_v18  ;;  %v1303_v36 = vsel %vm1293_vm10, %v1289_v9, 1326507024  ;;  %v1300_v2 = vsel %vm1292_vm8, %v1283_v7, %v1299_v59  ;;  %v1294_v21 = vsel %vm1290_vm6, %v1274_v54, %v1277_v27 }
 0x10f   : > { %v1058_v15 = vsub.s32 32, %v1057_v20  ;;  %v1062_v45 = vsub.s32 4294967266, %v1057_v20  ;;  %v1059_v52 = vshll.u32 %v1050_v11, %v1057_v20  ;;  %v1304_v39 = vsel %vm1292_vm8, %v1286_v37, %v1303_v36 }
 0x110   : > { %v1296_v34 = vsel %vm1292_vm8, %v1280_v51, %v1295_v47  ;;  %v1301_v50 = vsel %vm1291_vm7, %v1298_v10, %v1300_v2  ;;  %v1305_v33 = vsel %vm1291_vm7, %v1302_v29, %v1304_v39  ;;  %v1308_v0 = vshrl.u32 %v2568_v19, 16 }
 0x111   : > { %v1060_v43 = vshrl.u32 %v1042_v26, %v1058_v15  ;;  %v1063_v53 = vadd.s32 127, %v1062_v45  ;;  %v1309_v32 = vand.u32 65535, %v1305_v33  ;;  %v1310_v58 = vshrl.u32 %v1305_v33, 16 }
 0x112   : > { %v1331_v26 = vand.u32 65535, %v1301_v50  ;;  %v1332_v25 = vshrl.u32 %v1301_v50, 16  ;;  %v493_v56 = vadd.s32 1, %v1881_v24  ;;  %v2626_v5 = vadd.s32 3, %v1075_v28 }
 0x113   : > { %v1061_v11 = vor.u32 %v1060_v43, %v1059_v52  ;;  %v1064_v60 = vshll.u32 %v1063_v53, 23  ;;  %v1312_v16 = vmul.u32 %v1310_v58, %v2575_v31  ;;  %v491_v62 = vor.u32 8388608, %v2588_v55 }
 0x114   : > { %v2632_v12 = vsel %vm1291_vm7, %v1294_v21, %v1296_v34  ;;  %v1313_v27 = vmul.u32 %v1309_v32, %v1308_v0  ;;  %v1334_v13 = vmul.u32 %v1332_v25, %v2575_v31  ;;  %v1311_v22 = vmul.u32 %v1309_v32, %v2575_v31 }
 0x115   : > { %v1065_v1 = vor.u32 4788187, %v1064_v60  ;;  %v1068_v8 = vcvt.s32.f32 %v1061_v11  ;;  %v1315_v6 = vshll.u32 %v1312_v16, 16  ;;  %v1335_v30 = vmul.u32 %v1331_v26, %v1308_v0 }
 0x116   : > { %v1314_v17 = vmul.u32 %v1310_v58, %v1308_v0  ;;  %v1333_v18 = vmul.u32 %v1331_v26, %v2575_v31  ;;  %v1337_v51 = vshll.u32 %v1334_v13, 16  ;;  %vm494_vm11 = vcmp.gt.s32.totalorder %v493_v56, 0 }
 0x117   : > { %v1066_v4 = vand.u32 2147483647, %v1065_v1  ;;  %v1317_v14 = vshll.u32 %v1313_v27, 16  ;;  %vm1319_vm12 = vc.u32 %v1311_v22, %v1315_v6  ;;  %v1321_v37 = vadd.s32 %v1315_v6, %v1311_v22 }
 0x118   : > { %v1320_v61 = vsel %vm1319_vm12, 1, %v2148_v63  ;;  %v1336_v9 = vmul.u32 %v1332_v25, %v1308_v0  ;;  %v1339_v24 = vshll.u32 %v1335_v30, 16  ;;  %vm1341_vm13 = vc.u32 %v1333_v18, %v1337_v51 }
 0x119   : > { %v1069_v7 = vmul.f32 %v1068_v8, %v1066_v4  ;;  %v1322_v54 = vadd.s32 %v1320_v61, %v1314_v17  ;;  %vm1323_vm15 = vc.u32 %v1321_v37, %v1317_v14  ;;  %v1342_v20 = vsel %vm1341_vm13, 1, %v2148_v63 }
 0x11a   : > { %v1324_v15 = vsel %vm1323_vm15, 1, %v2148_v63  ;;  %v1343_v45 = vadd.s32 %v1337_v51, %v1333_v18  ;;  %v1344_v31 = vadd.s32 %v1342_v20, %v1336_v9  ;;  %v495_v47 = vsel %vm494_vm11, %v493_v56, 0 }
 0x11b   : > { %v1070_v28 = vxor.u32 2147483648, %v1069_v7  ;;  %v1316_v52 = vshrl.u32 %v1312_v16, 16  ;;  %v1326_v59 = vadd.s32 %v1324_v15, %v1322_v54  ;;  %v497_v29 = vand.u32 31, %v495_v47 }
 0x11c   : > { %v1318_v43 = vshrl.u32 %v1313_v27, 16  ;;  %vm1345_vm0 = vc.u32 %v1343_v45, %v1339_v24  ;;  %v1351_v53 = vmul.u32 %v2568_v19, %v2632_v12  ;;  %v1338_v50 = vshrl.u32 %v1334_v13, 16 }
 0x11d   : > { %v1071_v10 = vsel %vm950_vm14, %v1070_v28, %v1069_v7  ;;  %v1327_v39 = vadd.s32 %v1326_v59, %v1316_v52  ;;  %v1346_v21 = vsel %vm1345_vm0, 1, %v2148_v63  ;;  %v2649_v34 = vsub.s32 32, %v497_v29 }
 0x11e   : > { %v1074_v36 = vsel %vm2579_vm3, %v2257_v38, %v1071_v10  ;;  %v1340_v33 = vshrl.u32 %v1335_v30, 16  ;;  %v1348_v11 = vadd.s32 %v1346_v21, %v1344_v31  ;;  %v500_v60 = vshll.u32 %v2142_v40, %v497_v29 }
 0x11f   : > { %v1076_v2 = vmul.f32 %v1074_v36, %v1074_v36  ;;  %v2652_v3 = vadd.s32 %v1327_v39, %v1318_v43  ;;  %v2654_v0 = vadd.s32 %v1343_v45, %v1339_v24  ;;  %v501_v19 = vshrl.u32 %v2143_v42, %v2649_v34 }
 0x120   : > { %v1349_v26 = vadd.s32 %v1348_v11, %v1338_v50  ;;  %v503_v25 = vshll.u32 %v2143_v42, %v497_v29  ;;  %v504_v56 = vshrl.u32 %v2144_v44, %v2649_v34  ;;  %v2661_v8 = vshrl.u32 %v495_v47, 5 }
 0x121   : > { %v1077_v32 = vmul.f32 -0.001358992, %v1076_v2  ;;  %v1084_v58 = vmul.f32 -0.00019511016, %v1076_v2  ;;  %v506_v12 = vshll.u32 %v2144_v44, %v497_v29  ;;  %vm1353_vm14 = vc.u32 %v2652_v3, %v2654_v0 }
 0x122   : > { %v1350_v27 = vadd.s32 %v1349_v26, %v1340_v33  ;;  %v2666_v13 = vor.u32 %v501_v19, %v500_v60  ;;  %v507_v4 = vshrl.u32 %v2145_v46, %v2649_v34  ;;  %v509_v30 = vshll.u32 %v2145_v46, %v497_v29 }
 0x123   : > { %v1078_v1 = vadd.f32 0.041655596, %v1077_v32  ;;  %v1085_v16 = vadd.f32 0.008332121, %v1084_v58  ;;  %v510_v17 = vshrl.u32 %v2146_v48, %v2649_v34  ;;  %v2673_v51 = vor.u32 %v504_v56, %v503_v25 }
 0x124   : > { %v1354_v18 = vadd.s32 1, %v1350_v27  ;;  %v512_v7 = vshll.u32 %v2146_v48, %v497_v29  ;;  %v513_v14 = vshrl.u32 %v2147_v57, %v2649_v34  ;;  %vm515_vm1 = vcmp.lt.s32.totalorder %v2661_v8, 1 }
 0x125   : > { %v1079_v22 = vmul.f32 %v1078_v1, %v1076_v2  ;;  %v1086_v6 = vmul.f32 %v1085_v16, %v1076_v2  ;;  %v511_v9 = vor.u32 %v510_v17, %v509_v30  ;;  %v508_v28 = vor.u32 %v507_v4, %v506_v12 }
 0x126   : > { %v1355_v24 = vsel %vm1353_vm14, %v1354_v18, %v1350_v27  ;;  %v514_v54 = vor.u32 %v513_v14, %v512_v7  ;;  %vm518_vm2 = vcmp.lt.s32.totalorder %v2661_v8, 4  ;;  %vm517_vm3 = vcmp.lt.s32.totalorder %v2661_v8, 3 }
 0x127   : > { %v1080_v37 = vadd.f32 -0.4999988, %v1079_v22  ;;  %v1087_v61 = vadd.f32 -0.16666654, %v1086_v6  ;;  %v1356_v45 = vadd.s32 %v1355_v24, %v1351_v53  ;;  %v1093_v31 = vand.u32 3, %v2626_v5 }
 0x128   : > { %v523_v47 = vsel %vm515_vm1, %v2666_v13, %v2673_v51  ;;  %v524_v10 = vsel %vm518_vm2, %v511_v9, 920167782  ;;  %v2690_v43 = vshll.u32 %v491_v62, 8  ;;  %vm516_vm4 = vcmp.lt.s32.totalorder %v2661_v8, 2 }
 0x129   : > { %v1081_v20 = vmul.f32 %v1080_v37, %v1076_v2  ;;  %v1088_v15 = vmul.f32 %v1087_v61, %v1076_v2  ;;  %v1357_v29 = vadd.s32 536870912, %v1356_v45  ;;  %v525_v5 = vsel %vm517_vm3, %v508_v28, %v524_v10 }
 0x12a   : > { %v527_v53 = vsel %vm515_vm1, %v2673_v51, %v508_v28  ;;  %v528_v2 = vsel %vm518_vm2, %v514_v54, 1326507024  ;;  %v526_v55 = vsel %vm516_vm4, %v523_v47, %v525_v5  ;;  %vm1094_vm5 = vcmp.lt.s32.totalorder %v1093_v31, 2 }
 0x12b   : > { %v1082_v52 = vadd.f32 1.0, %v1081_v20  ;;  %v1089_v59 = vadd.f32 1.0, %v1088_v15  ;;  %v2700_v50 = vshrl.u32 %v1357_v29, 30  ;;  %vm1095_vm6 = vcmp.eq.s32.totalorder %v1093_v31, 0 }
 0x12c   : > { %v529_v62 = vsel %vm517_vm3, %v511_v9, %v528_v2  ;;  %v557_v33 = vshrl.u32 %v526_v55, 16  ;;  %vm1098_vm7 = vcmp.eq.s32.totalorder %v1093_v31, 2  ;;  %v532_v32 = vand.u32 65535, %v2690_v43 }
 0x12d   : > { %v1090_v39 = vmul.f32 %v1089_v59, %v1074_v36  ;;  %v1099_v21 = vxor.u32 2147483648, %v1082_v52  ;;  %v1359_v60 = vshll.u32 %v2700_v50, 30  ;;  %v499_v58 = vshrl.u32 %v2142_v40, %v2649_v34  ;;  %v305_v59 = vpop.f32.mrf.mxu1 }
 0x12e   : > { %v530_v26 = vsel %vm516_vm4, %v527_v53, %v529_v62  ;;  %v556_v19 = vand.u32 65535, %v526_v55  ;;  %v2712_v16 = vmul.u32 %v557_v33, %v532_v32  ;;  %vm1091_vm8 = vweird.f32 %v2257_v38 }
 0x12f   : > { %v1096_v11 = vxor.u32 2147483648, %v1090_v39  ;;  %v1100_v36 = vsel %vm1098_vm7, %v1099_v21, %v1090_v39  ;;  %v1360_v56 = vsub.s32 %v1356_v45, %v1359_v60  ;;  %v534_v1 = vand.u32 65535, %v530_v26  ;;  %v2735_v60 = vld [vmem:[%s3169_s2] ss:$0 sm:$0xff] }
 0x130   : > { %v533_v27 = vshrl.u32 %v2690_v43, 16  ;;  %v535_v4 = vshrl.u32 %v530_v26, 16  ;;  %v1352_v34 = vadd.s32 %v2654_v0, %v2652_v3  ;;  %v519_v38 = vsel %vm515_vm1, %v499_v58, %v2666_v13 }
 0x131   : > { %v1097_v25 = vsel %vm1095_vm6, %v1082_v52, %v1096_v11  ;;  %vm1361_vm10 = vcmp.lt.s32.totalorder %v1360_v56, 0  ;;  %v1362_v6 = vsub.s32 0, %v1360_v56  ;;  %v562_v14 = vshll.u32 %v2712_v16, 16 }
 0x132   : > { %v1101_v12 = vsel %vm1094_vm5, %v1097_v25, %v1100_v36  ;;  %v537_v30 = vmul.u32 %v535_v4, %v532_v32  ;;  %v538_v17 = vmul.u32 %v534_v1, %v533_v27  ;;  %v560_v7 = vmul.u32 %v556_v19, %v533_v27 }
 0x133   : > { %v1102_v22 = vsel %vm1091_vm8, nan, %v1101_v12  ;;  %v1363_v18 = vsel %vm1361_vm10, %v1362_v6, %v1360_v56  ;;  %v520_v61 = vsel %vm518_vm2, %v508_v28, 2102212464  ;;  %v536_v9 = vmul.u32 %v534_v1, %v532_v32  ;;  %v311_v12 = vpop.f32.mrf.mxu2 }
 0x134   : > { %1573 = vst.msk [vmem:[%s2561_s8 + $0x20] sm:$0xff] %vm1568_vm9, %v1102_v22  ;;  %v1364_v37 = vclz %v1363_v18  ;;  %v540_v24 = vshll.u32 %v537_v30, 16  ;;  %v539_v54 = vmul.u32 %v535_v4, %v533_v27  ;;  %v558_v20 = vmul.u32 %v556_v19, %v532_v32 }
 0x135   : > { %v561_v15 = vmul.u32 %v557_v33, %v533_v27  ;;  %v563_v3 = vshrl.u32 %v2712_v16, 16  ;;  %v542_v45 = vshll.u32 %v538_v17, 16  ;;  %v564_v47 = vshll.u32 %v560_v7, 16 }
 0x136   : > { %v1897_v0 = vadd.s32 4294967294, %v1364_v37  ;;  %vm544_vm11 = vc.u32 %v536_v9, %v540_v24  ;;  %v546_v31 = vadd.s32 %v540_v24, %v536_v9  ;;  %vm566_vm12 = vc.u32 %v558_v20, %v562_v14 }
 0x137   : > { %v545_v13 = vsel %vm544_vm11, 1, %v2148_v63  ;;  %v568_v10 = vadd.s32 %v562_v14, %v558_v20  ;;  %v567_v28 = vsel %vm566_vm12, 1, %v2148_v63  ;;  %v541_v21 = vshrl.u32 %v537_v30, 16 }
 0x138   : > { %vm1898_vm13 = vcmp.lt.s32.totalorder %v1897_v0, 0  ;;  %v547_v52 = vadd.s32 %v545_v13, %v539_v54  ;;  %vm548_vm15 = vc.u32 %v546_v31, %v542_v45  ;;  %v569_v53 = vadd.s32 %v567_v28, %v561_v15 }
 0x139   : > { %v1367_v29 = vsel %vm1898_vm13, 0, %v1897_v0  ;;  %v549_v5 = vsel %vm548_vm15, 1, %v2148_v63  ;;  %vm570_vm0 = vc.u32 %v568_v10, %v564_v47  ;;  %v543_v33 = vshrl.u32 %v538_v17, 16 }
 0x13a   : > { %v1368_v2 = vsub.s32 32, %v1367_v29  ;;  %v1372_v39 = vsub.s32 4294967266, %v1367_v29  ;;  %v551_v55 = vadd.s32 %v549_v5, %v547_v52  ;;  %v1369_v62 = vshll.u32 %v1360_v56, %v1367_v29 }
 0x13b   : > { %v571_v11 = vsel %vm570_vm0, 1, %v2148_v63  ;;  %v306_v32 = vadd.f32 %v2735_v60, %v305_v59  ;;  %v1382_v25 = vsub.s32 4, %v2700_v50  ;;  %v521_v56 = vsel %vm517_vm3, %v2673_v51, %v520_v61 }
 0x13c   : > { %v1370_v36 = vshrl.u32 %v1352_v34, %v1368_v2  ;;  %v1373_v58 = vadd.s32 127, %v1372_v39  ;;  %v552_v26 = vadd.s32 %v551_v55, %v541_v21  ;;  %v573_v19 = vadd.s32 %v571_v11, %v569_v53 }
 0x13d   : > { %v565_v1 = vshrl.u32 %v560_v7, 16  ;;  %v2742_v16 = vmul.f32 30.0, %v306_v32  ;;  %vm1260_vm14 = vcmp.lt.s32.totalorder %v2532_v49, 0  ;;  %v572_v34 = vadd.s32 %v568_v10, %v564_v47 }
 0x13e   : > { %v1371_v27 = vor.u32 %v1370_v36, %v1369_v62  ;;  %v1374_v4 = vshll.u32 %v1373_v58, 23  ;;  %v553_v22 = vadd.s32 %v552_v26, %v543_v33  ;;  %v574_v6 = vadd.s32 %v573_v19, %v563_v3 }
 0x13f   : > { %v793_v30 = vand.u32 2147483647, %v2742_v16  ;;  %v796_v17 = vand.u32 2139095040, %v2742_v16  ;;  %v522_v14 = vsel %vm516_vm4, %v519_v38, %v521_v56  ;;  %v312_v7 = vadd.f32 %v2735_v60, %v311_v12 }
 0x140   : > { %v1375_v18 = vor.u32 4788187, %v1374_v4  ;;  %v575_v51 = vadd.s32 %v574_v6, %v565_v1  ;;  %v1383_v37 = vsel %vm1260_vm14, %v1382_v25, %v2700_v50  ;;  %vm578_vm1 = vc.u32 %v553_v22, %v572_v34 }
 0x141   : > { %v797_v61 = vshrl.u32 %v796_v17, 23  ;;  %v800_v9 = vand.u32 8388607, %v793_v30  ;;  %v1378_v54 = vcvt.s32.f32 %v1371_v27  ;;  %vm2757_vm2 = vcmp.le.f32.partialorder %v1258_v41, 0.7853982 }
 0x142   : > { %v1376_v24 = vand.u32 2147483647, %v1375_v18  ;;  %v579_v20 = vadd.s32 1, %v575_v51  ;;  %v576_v38 = vmul.u32 %v2690_v43, %v522_v14  ;;  %v1385_v50 = vsel %vm2757_vm2, 0, %v1383_v37 }
 0x143   : > { %v1887_v15 = vadd.s32 4294967169, %v797_v61  ;;  %v2764_v45 = vmul.f32 30.0, %v312_v7  ;;  %v801_v13 = vor.u32 8388608, %v800_v9  ;;  %v1402_v52 = vadd.s32 3, %v1385_v50 }
 0x144   : > { %v1379_v3 = vmul.f32 %v1378_v54, %v1376_v24  ;;  %v580_v0 = vsel %vm578_vm1, %v579_v20, %v575_v51  ;;  %vm485_vm4 = vcmp.lt.s32.totalorder %v2566_v23, 0  ;;  %v577_v36 = vadd.s32 %v572_v34, %v553_v22 }
 0x145   : > { %v581_v31 = vadd.s32 %v580_v0, %v576_v38  ;;  %v803_v47 = vadd.s32 1, %v1887_v15  ;;  %v1103_v43 = vand.u32 2147483647, %v2764_v45  ;;  %v2774_v2 = vshll.u32 %v801_v13, 8 }
 0x146   : > { %v1380_v10 = vxor.u32 2147483648, %v1379_v3  ;;  %v2779_v21 = vand.u32 3, %v1402_v52  ;;  %v1106_v33 = vand.u32 2139095040, %v2764_v45  ;;  %vm1401_vm10 = vweird.f32 %v2532_v49 }
 0x147   : > { %v582_v28 = vadd.s32 536870912, %v581_v31  ;;  %vm804_vm3 = vcmp.gt.s32.totalorder %v803_v47, 0  ;;  %v2784_v58 = vand.u32 8388607, %v1103_v43  ;;  %v2789_v25 = vand.u32 65535, %v2774_v2 }
 0x148   : > { %v1381_v41 = vsel %vm1260_vm14, %v1380_v10, %v1379_v3  ;;  %v805_v59 = vsel %vm804_vm3, %v803_v47, 0  ;;  %v2792_v56 = vshrl.u32 %v2774_v2, 16  ;;  %vm1408_vm6 = vcmp.eq.s32.totalorder %v2779_v21, 2 }
 0x149   : > { %v2772_v29 = vsel %vm2757_vm2, %v2532_v49, %v1381_v41  ;;  %v583_v5 = vshrl.u32 %v582_v28, 30  ;;  %v807_v53 = vand.u32 31, %v805_v59  ;;  %v2800_v14 = vshrl.u32 %v805_v59, 5 }
 0x14a   : > { %v1386_v39 = vmul.f32 %v2772_v29, %v2772_v29  ;;  %v1107_v8 = vshrl.u32 %v1106_v33, 23  ;;  %vm1405_vm7 = vcmp.eq.s32.totalorder %v2779_v21, 0  ;;  %vm1404_vm8 = vcmp.lt.s32.totalorder %v2779_v21, 2 }
 0x14b   : > { %v584_v55 = vshll.u32 %v583_v5, 30  ;;  %v808_v62 = vsub.s32 32, %v807_v53  ;;  %v607_v19 = vsub.s32 4, %v583_v5  ;;  %v810_v27 = vshll.u32 %v2142_v40, %v807_v53 }
 0x14c   : > { %v1387_v11 = vmul.f32 -0.001358992, %v1386_v39  ;;  %v1394_v32 = vmul.f32 -0.00019511016, %v1386_v39  ;;  %v813_v4 = vshll.u32 %v2143_v42, %v807_v53  ;;  %v816_v51 = vshll.u32 %v2144_v44, %v807_v53 }
 0x14d   : > { %v2786_v26 = vsub.s32 %v581_v31, %v584_v55  ;;  %v811_v6 = vshrl.u32 %v2143_v42, %v808_v62  ;;  %v814_v34 = vshrl.u32 %v2144_v44, %v808_v62  ;;  %v817_v37 = vshrl.u32 %v2145_v46, %v808_v62 }
 0x14e   : > { %v1388_v1 = vadd.f32 0.041655596, %v1387_v11  ;;  %v1395_v12 = vadd.f32 0.008332121, %v1394_v32  ;;  %v819_v61 = vshll.u32 %v2145_v46, %v807_v53  ;;  %v820_v9 = vshrl.u32 %v2146_v48, %v808_v62 }
 0x14f   : > { %vm586_vm5 = vcmp.lt.s32.totalorder %v2786_v26, 0  ;;  %v587_v22 = vsub.s32 0, %v2786_v26  ;;  %v2811_v38 = vsel %vm485_vm4, %v607_v19, %v583_v5  ;;  %v809_v15 = vshrl.u32 %v2142_v40, %v808_v62 }
 0x150   : > { %v1389_v17 = vmul.f32 %v1388_v1, %v1386_v39  ;;  %v1396_v18 = vmul.f32 %v1395_v12, %v1386_v39  ;;  %v812_v3 = vor.u32 %v811_v6, %v810_v27  ;;  %v815_v50 = vor.u32 %v814_v34, %v813_v4 }
 0x151   : > { %v588_v7 = vsel %vm586_vm5, %v587_v22, %v2786_v26  ;;  %v822_v47 = vshll.u32 %v2146_v48, %v807_v53  ;;  %v818_v10 = vor.u32 %v817_v37, %v816_v51  ;;  %v821_v52 = vor.u32 %v820_v9, %v819_v61 }
 0x152   : > { %v1390_v24 = vadd.f32 -0.4999988, %v1389_v17  ;;  %v1397_v54 = vadd.f32 -0.16666654, %v1396_v18  ;;  %v589_v20 = vclz %v588_v7  ;;  %v823_v28 = vshrl.u32 %v2147_v57, %v808_v62 }
 0x153   : > { %vm825_vm11 = vcmp.lt.s32.totalorder %v2800_v14, 1  ;;  %vm828_vm13 = vcmp.lt.s32.totalorder %v2800_v14, 4  ;;  %vm2822_vm15 = vcmp.le.f32.partialorder %v483_v35, 0.7853982  ;;  %vm826_vm0 = vcmp.lt.s32.totalorder %v2800_v14, 2 }
 0x154   : > { %v1391_v0 = vmul.f32 %v1390_v24, %v1386_v39  ;;  %v1398_v31 = vmul.f32 %v1397_v54, %v1386_v39  ;;  %v1882_v13 = vadd.s32 4294967294, %v589_v20  ;;  %v824_v39 = vor.u32 %v823_v28, %v822_v47 }
 0x155   : > { %vm827_vm14 = vcmp.lt.s32.totalorder %v2800_v14, 3  ;;  %v829_v11 = vsel %vm825_vm11, %v809_v15, %v812_v3  ;;  %v830_v35 = vsel %vm828_vm13, %v818_v10, 2102212464  ;;  %v833_v19 = vsel %vm825_vm11, %v812_v3, %v815_v50 }
 0x156   : > { %v1392_v41 = vadd.f32 1.0, %v1391_v0  ;;  %v1399_v59 = vadd.f32 1.0, %v1398_v31  ;;  %vm1883_vm12 = vcmp.lt.s32.totalorder %v1882_v13, 0  ;;  %v834_v1 = vsel %vm828_vm13, %v821_v52, 920167782 }
 0x157   : > { %v592_v53 = vsel %vm1883_vm12, 0, %v1882_v13  ;;  %v835_v6 = vsel %vm827_vm14, %v818_v10, %v834_v1  ;;  %v837_v34 = vsel %vm825_vm11, %v815_v50, %v818_v10  ;;  %v838_v17 = vsel %vm828_vm13, %v824_v39, 1326507024 }
 0x158   : > { %v1400_v55 = vmul.f32 %v1399_v59, %v2772_v29  ;;  %v1409_v62 = vxor.u32 2147483648, %v1392_v41  ;;  %v593_v33 = vsub.s32 32, %v592_v53  ;;  %v597_v32 = vsub.s32 4294967266, %v592_v53 }
 0x159   : > { %v594_v29 = vshll.u32 %v2786_v26, %v592_v53  ;;  %v836_v7 = vsel %vm826_vm0, %v833_v19, %v835_v6  ;;  %v831_v54 = vsel %vm827_vm14, %v815_v50, %v830_v35  ;;  %v1111_v31 = vor.u32 8388608, %v2784_v58 }
 0x15a   : > { %v1406_v12 = vxor.u32 2147483648, %v1400_v55  ;;  %v1410_v27 = vsel %vm1408_vm6, %v1409_v62, %v1400_v55  ;;  %v595_v4 = vshrl.u32 %v577_v36, %v593_v33  ;;  %v598_v22 = vadd.s32 127, %v597_v32 }
 0x15b   : > { %v839_v36 = vsel %vm827_vm14, %v821_v52, %v838_v17  ;;  %v866_v9 = vand.u32 65535, %v836_v7  ;;  %v867_v0 = vshrl.u32 %v836_v7, 16  ;;  %v610_v13 = vsel %vm2822_vm15, 0, %v2811_v38 }
 0x15c   : > { %v1407_v18 = vsel %vm1405_vm7, %v1392_v41, %v1406_v12  ;;  %v596_v51 = vor.u32 %v595_v4, %v594_v29  ;;  %v599_v37 = vshll.u32 %v598_v22, 23  ;;  %v840_v61 = vsel %vm826_vm0, %v837_v34, %v839_v36 }
 0x15d   : > { %v1411_v26 = vsel %vm1404_vm8, %v1407_v18, %v1410_v27  ;;  %v844_v20 = vand.u32 65535, %v840_v61  ;;  %v845_v15 = vshrl.u32 %v840_v61, 16  ;;  %v870_v21 = vmul.u32 %v866_v9, %v2792_v56 }
 0x15e   : > { %v1412_v24 = vsel %vm1401_vm10, nan, %v1411_v26  ;;  %v600_v3 = vor.u32 4788187, %v599_v37  ;;  %v1893_v10 = vadd.s32 4294967169, %v1107_v8  ;;  %v603_v52 = vcvt.s32.f32 %v596_v51 }
 0x15f   : > { %1575 = vst.msk [vmem:[%s2561_s8 + $0x30] sm:$0xff] %vm1568_vm9, %v1412_v24  ;;  %v847_v49 = vmul.u32 %v845_v15, %v2789_v25  ;;  %v848_v47 = vmul.u32 %v844_v20, %v2792_v56  ;;  %v2871_v28 = vsel %vm826_vm0, %v829_v11, %v831_v54  ;;  %v869_v41 = vmul.u32 %v867_v0, %v2789_v25 }
 0x160   : > { %v601_v50 = vand.u32 2147483647, %v600_v3  ;;  %v846_v59 = vmul.u32 %v844_v20, %v2789_v25  ;;  %v849_v53 = vmul.u32 %v845_v15, %v2792_v56  ;;  %v868_v38 = vmul.u32 %v866_v9, %v2789_v25 }
 0x161   : > { %v850_v39 = vshll.u32 %v847_v49, 16  ;;  %v871_v62 = vmul.u32 %v867_v0, %v2792_v56  ;;  %v872_v33 = vshll.u32 %v869_v41, 16  ;;  %v874_v8 = vshll.u32 %v870_v21, 16 }
 0x162   : > { %v604_v55 = vmul.f32 %v603_v52, %v601_v50  ;;  %v852_v32 = vshll.u32 %v848_v47, 16  ;;  %v1113_v14 = vadd.s32 1, %v1893_v10  ;;  %v851_v22 = vshrl.u32 %v847_v49, 16 }
 0x163   : > { %vm854_vm1 = vc.u32 %v846_v59, %v850_v39  ;;  %v856_v35 = vadd.s32 %v850_v39, %v846_v59  ;;  %vm876_vm2 = vc.u32 %v868_v38, %v872_v33  ;;  %v878_v1 = vadd.s32 %v872_v33, %v868_v38 }
 0x164   : > { %v605_v11 = vxor.u32 2147483648, %v604_v55  ;;  %v855_v19 = vsel %vm854_vm1, 1, %v2148_v63  ;;  %v877_v27 = vsel %vm876_vm2, 1, %v2148_v63  ;;  %vm1114_vm5 = vcmp.gt.s32.totalorder %v1113_v14, 0 }
 0x165   : > { %v857_v12 = vadd.s32 %v855_v19, %v849_v53  ;;  %vm858_vm3 = vc.u32 %v856_v35, %v852_v32  ;;  %v879_v29 = vadd.s32 %v877_v27, %v871_v62  ;;  %vm880_vm6 = vc.u32 %v878_v1, %v874_v8 }
 0x166   : > { %v606_v25 = vsel %vm485_vm4, %v605_v11, %v604_v55  ;;  %v859_v56 = vsel %vm858_vm3, 1, %v2148_v63  ;;  %v881_v34 = vsel %vm880_vm6, 1, %v2148_v63  ;;  %v873_v18 = vshrl.u32 %v869_v41, 16 }
 0x167   : > { %v609_v4 = vsel %vm2822_vm15, %v2566_v23, %v606_v25  ;;  %v861_v6 = vadd.s32 %v859_v56, %v857_v12  ;;  %v883_v51 = vadd.s32 %v881_v34, %v879_v29  ;;  %v1115_v7 = vsel %vm1114_vm5, %v1113_v14, 0 }
 0x168   : > { %v611_v17 = vmul.f32 %v609_v4, %v609_v4  ;;  %v627_v36 = vadd.s32 3, %v610_v13  ;;  %v853_v26 = vshrl.u32 %v848_v47, 16  ;;  %v1117_v61 = vand.u32 31, %v1115_v7 }
 0x169   : > { %v862_v37 = vadd.s32 %v861_v6, %v851_v22  ;;  %v875_v54 = vshrl.u32 %v870_v21, 16  ;;  %v884_v20 = vadd.s32 %v883_v51, %v873_v18  ;;  %v2889_v5 = vadd.s32 %v878_v1, %v874_v8 }
 0x16a   : > { %v612_v9 = vmul.f32 -0.001358992, %v611_v17  ;;  %v619_v24 = vmul.f32 -0.00019511016, %v611_v17  ;;  %v886_v3 = vmul.u32 %v2774_v2, %v2871_v28  ;;  %v2893_v0 = vsub.s32 32, %v1117_v61 }
 0x16b   : > { %v2887_v15 = vadd.s32 %v862_v37, %v853_v26  ;;  %v885_v50 = vadd.s32 %v884_v20, %v875_v54  ;;  %v2895_v13 = vshrl.u32 %v1115_v7, 5  ;;  %v1120_v21 = vshll.u32 %v2142_v40, %v1117_v61 }
 0x16c   : > { %v613_v49 = vadd.f32 0.041655596, %v612_v9  ;;  %v620_v10 = vadd.f32 0.008332121, %v619_v24  ;;  %v1121_v47 = vshrl.u32 %v2143_v42, %v2893_v0  ;;  %v1123_v52 = vshll.u32 %v2143_v42, %v1117_v61 }
 0x16d   : > { %vm888_vm4 = vc.u32 %v2887_v15, %v2889_v5  ;;  %v889_v2 = vadd.s32 1, %v885_v50  ;;  %v1124_v28 = vshrl.u32 %v2144_v44, %v2893_v0  ;;  %v1126_v53 = vshll.u32 %v2144_v44, %v1117_v61 }
 0x16e   : > { %v614_v41 = vmul.f32 %v613_v49, %v611_v17  ;;  %v621_v59 = vmul.f32 %v620_v10, %v611_v17  ;;  %v1127_v39 = vshrl.u32 %v2145_v46, %v2893_v0  ;;  %v1129_v38 = vshll.u32 %v2145_v46, %v1117_v61 }
 0x16f   : > { %v1130_v55 = vshrl.u32 %v2146_v48, %v2893_v0  ;;  %v890_v8 = vsel %vm888_vm4, %v889_v2, %v885_v50  ;;  %v2911_v32 = vor.u32 %v1121_v47, %v1120_v21  ;;  %v2913_v14 = vor.u32 %v1124_v28, %v1123_v52 }
 0x170   : > { %v615_v62 = vadd.f32 -0.4999988, %v614_v41  ;;  %v622_v33 = vadd.f32 -0.16666654, %v621_v59  ;;  %v891_v35 = vadd.s32 %v890_v8, %v886_v3  ;;  %v1128_v11 = vor.u32 %v1127_v39, %v1126_v53 }
 0x171   : > { %v1131_v19 = vor.u32 %v1130_v55, %v1129_v38  ;;  %v1132_v27 = vshll.u32 %v2146_v48, %v1117_v61  ;;  %v1133_v25 = vshrl.u32 %v2147_v57, %v2893_v0  ;;  %v628_v56 = vand.u32 3, %v627_v36 }
 0x172   : > { %v616_v1 = vmul.f32 %v615_v62, %v611_v17  ;;  %v623_v12 = vmul.f32 %v622_v33, %v611_v17  ;;  %v892_v29 = vadd.s32 536870912, %v891_v35  ;;  %v2920_v22 = vshll.u32 %v1111_v31, 8 }
 0x173   : > { %v1134_v18 = vor.u32 %v1133_v25, %v1132_v27  ;;  %vm1138_vm7 = vcmp.lt.s32.totalorder %v2895_v13, 4  ;;  %vm1135_vm8 = vcmp.lt.s32.totalorder %v2895_v13, 1  ;;  %vm1137_vm10 = vcmp.lt.s32.totalorder %v2895_v13, 3 }
 0x174   : > { %v617_v6 = vadd.f32 1.0, %v616_v1  ;;  %v624_v34 = vadd.f32 1.0, %v623_v12  ;;  %v2923_v51 = vshrl.u32 %v892_v29, 30  ;;  %v1144_v17 = vsel %vm1138_vm7, %v1131_v19, 920167782 }
 0x175   : > { %v1143_v58 = vsel %vm1135_vm8, %v2911_v32, %v2913_v14  ;;  %v1145_v31 = vsel %vm1137_vm10, %v1128_v11, %v1144_v17  ;;  %vm626_vm11 = vweird.f32 %v2566_v23  ;;  %vm629_vm12 = vcmp.lt.s32.totalorder %v628_v56, 2 }
 0x176   : > { %v625_v7 = vmul.f32 %v624_v34, %v609_v4  ;;  %v634_v36 = vxor.u32 2147483648, %v617_v6  ;;  %vm630_vm13 = vcmp.eq.s32.totalorder %v628_v56, 0  ;;  %v894_v26 = vshll.u32 %v2923_v51, 30 }
 0x177   : > { %vm1136_vm15 = vcmp.lt.s32.totalorder %v2895_v13, 2  ;;  %v1147_v4 = vsel %vm1135_vm8, %v2913_v14, %v1128_v11  ;;  %v1148_v61 = vsel %vm1138_vm7, %v1134_v18, 1326507024  ;;  %vm633_vm0 = vcmp.eq.s32.totalorder %v628_v56, 2 }
 0x178   : > { %v631_v37 = vxor.u32 2147483648, %v625_v7  ;;  %v895_v9 = vsub.s32 %v891_v35, %v894_v26  ;;  %v1146_v24 = vsel %vm1136_vm15, %v1143_v58, %v1145_v31  ;;  %v1149_v54 = vsel %vm1137_vm10, %v1131_v19, %v1148_v61  ;;  %v317_v58 = vpop.f32.mrf.mxu3 }
 0x179   : > { %v635_v3 = vsel %vm633_vm0, %v634_v36, %v625_v7  ;;  %v1150_v49 = vsel %vm1136_vm15, %v1147_v4, %v1149_v54  ;;  %v1152_v10 = vand.u32 65535, %v2920_v22  ;;  %v1153_v47 = vshrl.u32 %v2920_v22, 16 }
 0x17a   : > { %v632_v20 = vsel %vm630_vm13, %v617_v6, %v631_v37  ;;  %vm896_vm14 = vcmp.lt.s32.totalorder %v895_v9, 0  ;;  %v897_v21 = vsub.s32 0, %v895_v9  ;;  %v1154_v41 = vand.u32 65535, %v1150_v49 }
 0x17b   : > { %v636_v50 = vsel %vm629_vm12, %v632_v20, %v635_v3  ;;  %v1155_v59 = vshrl.u32 %v1150_v49, 16  ;;  %v1176_v2 = vand.u32 65535, %v1146_v24  ;;  %v1177_v53 = vshrl.u32 %v1146_v24, 16 }
 0x17c   : > { %v637_v52 = vsel %vm626_vm11, nan, %v636_v50  ;;  %v898_v28 = vsel %vm896_vm14, %v897_v21, %v895_v9  ;;  %v1158_v55 = vmul.u32 %v1154_v41, %v1153_v47  ;;  %v887_v62 = vadd.s32 %v2889_v5, %v2887_v15 }
 0x17d   : > { %1570 = vst.msk [vmem:[%s2561_s8 + $0x8] sm:$0xff] %vm1568_vm9, %v637_v52  ;;  %v899_v39 = vclz %v898_v28  ;;  %v1157_v38 = vmul.u32 %v1155_v59, %v1152_v10  ;;  %v1119_v33 = vshrl.u32 %v2142_v40, %v2893_v0  ;;  %v1156_v35 = vmul.u32 %v1154_v41, %v1152_v10 }
 0x17e   : > { %v1180_v19 = vmul.u32 %v1176_v2, %v1153_v47  ;;  %v1140_v1 = vsel %vm1138_vm7, %v1128_v11, 2102212464  ;;  %v1159_v12 = vmul.u32 %v1155_v59, %v1153_v47  ;;  %v1178_v27 = vmul.u32 %v1176_v2, %v1152_v10 }
 0x17f   : > { %v1888_v8 = vadd.s32 4294967294, %v899_v39  ;;  %v1160_v23 = vshll.u32 %v1157_v38, 16  ;;  %v1179_v25 = vmul.u32 %v1177_v53, %v1152_v10  ;;  %v1162_v56 = vshll.u32 %v1158_v55, 16 }
 0x180   : > { %v1181_v5 = vmul.u32 %v1177_v53, %v1153_v47  ;;  %v1184_v7 = vshll.u32 %v1180_v19, 16  ;;  %v1161_v61 = vshrl.u32 %v1157_v38, 16  ;;  %v1163_v10 = vshrl.u32 %v1158_v55, 16 }
 0x181   : > { %vm1889_vm1 = vcmp.lt.s32.totalorder %v1888_v8, 0  ;;  %vm1164_vm2 = vc.u32 %v1156_v35, %v1160_v23  ;;  %v1166_v29 = vadd.s32 %v1160_v23, %v1156_v35  ;;  %v1182_v34 = vshll.u32 %v1179_v25, 16 }
 0x182   : > { %v902_v6 = vsel %vm1889_vm1, 0, %v1888_v8  ;;  %v1165_v15 = vsel %vm1164_vm2, 1, %v2148_v63  ;;  %v1183_v21 = vshrl.u32 %v1179_v25, 16  ;;  %v1139_v41 = vsel %vm1135_vm8, %v1119_v33, %v2911_v32 }
 0x183   : > { %v903_v0 = vsub.s32 32, %v902_v6  ;;  %v907_v18 = vsub.s32 4294967266, %v902_v6  ;;  %v1167_v17 = vadd.s32 %v1165_v15, %v1159_v12  ;;  %v904_v36 = vshll.u32 %v895_v9, %v902_v6 }
 0x184   : > { %vm1168_vm3 = vc.u32 %v1166_v29, %v1162_v56  ;;  %vm1186_vm5 = vc.u32 %v1178_v27, %v1182_v34  ;;  %v1188_v11 = vadd.s32 %v1182_v34, %v1178_v27  ;;  %v318_v9 = vadd.f32 %v2735_v60, %v317_v58 }
 0x185   : > { %v905_v31 = vshrl.u32 %v887_v62, %v903_v0  ;;  %v908_v26 = vadd.s32 127, %v907_v18  ;;  %v1169_v37 = vsel %vm1168_vm3, 1, %v2148_v63  ;;  %v1187_v4 = vsel %vm1186_vm5, 1, %v2148_v63 }
 0x186   : > { %v1171_v24 = vadd.s32 %v1169_v37, %v1167_v17  ;;  %v1189_v54 = vadd.s32 %v1187_v4, %v1181_v5  ;;  %vm1190_vm6 = vc.u32 %v1188_v11, %v1184_v7  ;;  %v1141_v59 = vsel %vm1137_vm10, %v2913_v14, %v1140_v1 }
 0x187   : > { %v906_v20 = vor.u32 %v905_v31, %v904_v36  ;;  %v909_v3 = vshll.u32 %v908_v26, 23  ;;  %v1191_v49 = vsel %vm1190_vm6, 1, %v2148_v63  ;;  %v2972_v2 = vmul.f32 30.0, %v318_v9 }
 0x188   : > { %v1172_v50 = vadd.s32 %v1171_v24, %v1161_v61  ;;  %v1193_v47 = vadd.s32 %v1191_v49, %v1189_v54  ;;  %v917_v28 = vsub.s32 4, %v2923_v51  ;;  %v1185_v60 = vshrl.u32 %v1180_v19, 16 }
 0x189   : > { %v910_v52 = vor.u32 4788187, %v909_v3  ;;  %v913_v55 = vcvt.s32.f32 %v906_v20  ;;  %v2977_v62 = vadd.s32 %v1188_v11, %v1184_v7  ;;  %v1416_v8 = vand.u32 2139095040, %v2972_v2 }
 0x18a   : > { %v2975_v53 = vadd.s32 %v1172_v50, %v1163_v10  ;;  %v1194_v39 = vadd.s32 %v1193_v47, %v1183_v21  ;;  %v1142_v32 = vsel %vm1136_vm15, %v1139_v41, %v1141_v59  ;;  %vm795_vm4 = vcmp.lt.s32.totalorder %v2742_v16, 0 }
 0x18b   : > { %v911_v38 = vand.u32 2147483647, %v910_v52  ;;  %v1417_v35 = vshrl.u32 %v1416_v8, 23  ;;  %v918_v23 = vsel %vm795_vm4, %v917_v28, %v2923_v51  ;;  %v1196_v12 = vmul.u32 %v2920_v22, %v1142_v32 }
 0x18c   : > { %v1195_v33 = vadd.s32 %v1194_v39, %v1185_v60  ;;  %vm1198_vm7 = vc.u32 %v2975_v53, %v2977_v62  ;;  %vm794_vm8 = vcmp.le.f32.partialorder %v793_v30, 0.7853982  ;;  %v1413_v51 = vand.u32 2147483647, %v2972_v2 }
 0x18d   : > { %v914_v14 = vmul.f32 %v913_v55, %v911_v38  ;;  %v1899_v27 = vadd.s32 4294967169, %v1417_v35  ;;  %v920_v56 = vsel %vm794_vm8, 0, %v918_v23  ;;  %vm936_vm0 = vweird.f32 %v2742_v16 }
 0x18e   : > { %v1199_v19 = vadd.s32 1, %v1195_v33  ;;  %v937_v0 = vadd.s32 3, %v920_v56  ;;  %v1420_v26 = vand.u32 8388607, %v1413_v51  ;;  %vm1105_vm6 = vcmp.lt.s32.totalorder %v2764_v45, 0 }
 0x18f   : > { %v915_v1 = vxor.u32 2147483648, %v914_v14  ;;  %v1423_v6 = vadd.s32 1, %v1899_v27  ;;  %v1197_v27 = vadd.s32 %v2977_v62, %v2975_v53 }
 0x190   : > { %v1200_v13 = vsel %vm1198_vm7, %v1199_v19, %v1195_v33  ;;  %v938_v31 = vand.u32 3, %v937_v0  ;;  %v1421_v49 = vor.u32 8388608, %v1420_v26 }
 0x191   : > { %v916_v25 = vsel %vm795_vm4, %v915_v1, %v914_v14  ;;  %v1201_v29 = vadd.s32 %v1200_v13, %v1196_v12  ;;  %vm1424_vm10 = vcmp.gt.s32.totalorder %v1423_v6, 0  ;;  %vm3059_vm4 = vcmp.le.f32.partialorder %v1103_v43, 0.7853982 }
 0x192   : > { %v919_v15 = vsel %vm794_vm8, %v2742_v16, %v916_v25  ;;  %v1425_v18 = vsel %vm1424_vm10, %v1423_v6, 0  ;;  %vm940_vm12 = vcmp.eq.s32.totalorder %v938_v31, 0  ;;  %vm943_vm13 = vcmp.eq.s32.totalorder %v938_v31, 2 }
 0x193   : > { %v921_v5 = vmul.f32 %v919_v15, %v919_v15  ;;  %v1202_v34 = vadd.s32 536870912, %v1201_v29  ;;  %v1427_v36 = vand.u32 31, %v1425_v18  ;;  %v2998_v9 = vshrl.u32 %v1425_v18, 5 }
 0x194   : > { %vm939_vm15 = vcmp.lt.s32.totalorder %v938_v31, 2  ;;  %v3022_v13 = vshll.u32 %v1421_v49, 8 }
 0x195   : > { %v922_v17 = vmul.f32 -0.001358992, %v921_v5  ;;  %v929_v22 = vmul.f32 -0.00019511016, %v921_v5  ;;  %v2991_v7 = vshrl.u32 %v1202_v34, 30  ;;  %v2996_v37 = vsub.s32 32, %v1427_v36 }
 0x196   : > { %v1430_v41 = vshll.u32 %v2142_v40, %v1427_v36  ;;  %v1433_v28 = vshll.u32 %v2143_v42, %v1427_v36  ;;  %v1439_v8 = vshll.u32 %v2145_v46, %v1427_v36  ;;  %v1442_v12 = vshll.u32 %v2146_v48, %v1427_v36 }
 0x197   : > { %v923_v30 = vadd.f32 0.041655596, %v922_v17  ;;  %v930_v11 = vadd.f32 0.008332121, %v929_v22  ;;  %v1204_v58 = vshll.u32 %v2991_v7, 30  ;;  %v1431_v10 = vshrl.u32 %v2143_v42, %v2996_v37 }
 0x198   : > { %v1434_v50 = vshrl.u32 %v2144_v44, %v2996_v37  ;;  %v1437_v60 = vshrl.u32 %v2145_v46, %v2996_v37  ;;  %v1440_v39 = vshrl.u32 %v2146_v48, %v2996_v37  ;;  %v1443_v32 = vshrl.u32 %v2147_v57, %v2996_v37 }
 0x199   : > { %v924_v4 = vmul.f32 %v923_v30, %v921_v5  ;;  %v931_v61 = vmul.f32 %v930_v11, %v921_v5  ;;  %v1205_v24 = vsub.s32 %v1201_v29, %v1204_v58  ;;  %v3014_v14 = vor.u32 %v1431_v10, %v1430_v41 }
 0x19a   : > { %v3016_v35 = vor.u32 %v1434_v50, %v1433_v28  ;;  %v1436_v42 = vshll.u32 %v2144_v44, %v1427_v36  ;;  %v1441_v1 = vor.u32 %v1440_v39, %v1439_v8  ;;  %v1444_v56 = vor.u32 %v1443_v32, %v1442_v12 }
 0x19b   : > { %v925_v54 = vadd.f32 -0.4999988, %v924_v4  ;;  %v932_v20 = vadd.f32 -0.16666654, %v931_v61  ;;  %vm1206_vm11 = vcmp.lt.s32.totalorder %v1205_v24, 0  ;;  %v1207_v3 = vsub.s32 0, %v1205_v24 }
 0x19c   : > { %v1438_v46 = vor.u32 %v1437_v60, %v1436_v42  ;;  %vm1445_vm1 = vcmp.lt.s32.totalorder %v2998_v9, 1  ;;  %vm1447_vm2 = vcmp.lt.s32.totalorder %v2998_v9, 3  ;;  %vm1448_vm3 = vcmp.lt.s32.totalorder %v2998_v9, 4 }
 0x19d   : > { %v926_v21 = vmul.f32 %v925_v54, %v921_v5  ;;  %v933_v47 = vmul.f32 %v932_v20, %v921_v5  ;;  %v1208_v52 = vsel %vm1206_vm11, %v1207_v3, %v1205_v24  ;;  %v1453_v62 = vsel %vm1445_vm1, %v3014_v14, %v3016_v35 }
 0x19e   : > { %v1209_v59 = vclz %v1208_v52  ;;  %v1454_v6 = vsel %vm1448_vm3, %v1441_v1, 920167782  ;;  %vm1446_vm5 = vcmp.lt.s32.totalorder %v2998_v9, 2  ;;  %v1457_v22 = vsel %vm1445_vm1, %v3016_v35, %v1438_v46 }
 0x19f   : > { %v927_v38 = vadd.f32 1.0, %v926_v21  ;;  %v934_v55 = vadd.f32 1.0, %v933_v47  ;;  %v1455_v17 = vsel %vm1447_vm2, %v1438_v46, %v1454_v6  ;;  %v1458_v16 = vsel %vm1448_vm3, %v1444_v56, 1326507024 }
 0x1a0   : > { %v1894_v33 = vadd.s32 4294967294, %v1209_v59  ;;  %v1456_v11 = vsel %vm1446_vm5, %v1453_v62, %v1455_v17  ;;  %v1459_v58 = vsel %vm1447_vm2, %v1441_v1, %v1458_v16  ;;  %v1462_v31 = vand.u32 65535, %v3022_v13 }
 0x1a1   : > { %v935_v23 = vmul.f32 %v934_v55, %v919_v15  ;;  %v944_v19 = vxor.u32 2147483648, %v927_v38  ;;  %v1486_v26 = vand.u32 65535, %v1456_v11  ;;  %v1487_v4 = vshrl.u32 %v1456_v11, 16 }
 0x1a2   : > { %vm1895_vm14 = vcmp.lt.s32.totalorder %v1894_v33, 0  ;;  %v1463_v54 = vshrl.u32 %v3022_v13, 16  ;;  %v1227_v52 = vsub.s32 4, %v2991_v7  ;;  %v1429_v41 = vshrl.u32 %v2142_v40, %v2996_v37 }
 0x1a3   : > { %v941_v57 = vxor.u32 2147483648, %v935_v23  ;;  %v1212_v25 = vsel %vm1895_vm14, 0, %v1894_v33  ;;  %v945_v53 = vsel %vm943_vm13, %v944_v19, %v935_v23  ;;  %v1489_v49 = vmul.u32 %v1487_v4, %v1462_v31 }
 0x1a4   : > { %v1213_v29 = vsub.s32 32, %v1212_v25  ;;  %v1217_v44 = vsub.s32 4294967266, %v1212_v25  ;;  %v1214_v5 = vshll.u32 %v1205_v24, %v1212_v25  ;;  %v1460_v24 = vsel %vm1446_vm5, %v1457_v22, %v1459_v58 }
 0x1a5   : > { %v942_v48 = vsel %vm940_vm12, %v927_v38, %v941_v57  ;;  %v1464_v20 = vand.u32 65535, %v1460_v24  ;;  %v1465_v3 = vshrl.u32 %v1460_v24, 16  ;;  %v1490_v47 = vmul.u32 %v1486_v26, %v1463_v54 }
 0x1a6   : > { %v946_v15 = vsel %vm939_vm15, %v942_v48, %v945_v53  ;;  %v1215_v34 = vshrl.u32 %v1197_v27, %v1213_v29  ;;  %v1218_v0 = vadd.s32 127, %v1217_v44  ;;  %v1450_v39 = vsel %vm1448_vm3, %v1438_v46, 2102212464 }
 0x1a7   : > { %v947_v18 = vsel %vm936_vm0, nan, %v946_v15  ;;  %v1467_v59 = vmul.u32 %v1465_v3, %v1462_v31  ;;  %v1468_v28 = vmul.u32 %v1464_v20, %v1463_v54  ;;  %v1488_v38 = vmul.u32 %v1486_v26, %v1462_v31 }
 0x1a8   : > { %1572 = vst.msk [vmem:[%s2561_s8 + $0x18] sm:$0xff] %vm1568_vm9, %v947_v18  ;;  %v1216_v36 = vor.u32 %v1215_v34, %v1214_v5  ;;  %v1219_v30 = vshll.u32 %v1218_v0, 23  ;;  %v1492_v55 = vshll.u32 %v1489_v49, 16  ;;  %v1466_v43 = vmul.u32 %v1464_v20, %v1462_v31 }
 0x1a9   : > { %v1469_v8 = vmul.u32 %v1465_v3, %v1463_v54  ;;  %v1470_v32 = vshll.u32 %v1467_v59, 16  ;;  %v1491_v33 = vmul.u32 %v1487_v4, %v1463_v54  ;;  %v1494_v23 = vshll.u32 %v1490_v47, 16 }
 0x1aa   : > { %v1220_v61 = vor.u32 4788187, %v1219_v30  ;;  %v1223_v21 = vcvt.s32.f32 %v1216_v36  ;;  %vm1496_vm7 = vc.u32 %v1488_v38, %v1492_v55  ;;  %v1498_v19 = vadd.s32 %v1492_v55, %v1488_v38 }
 0x1ab   : > { %v1472_v1 = vshll.u32 %v1468_v28, 16  ;;  %vm1474_vm8 = vc.u32 %v1466_v43, %v1470_v32  ;;  %v1476_v12 = vadd.s32 %v1470_v32, %v1466_v43  ;;  %v1497_v40 = vsel %vm1496_vm7, 1, %v2148_v63 }
 0x1ac   : > { %v1221_v50 = vand.u32 2147483647, %v1220_v61  ;;  %v1475_v27 = vsel %vm1474_vm8, 1, %v2148_v63  ;;  %v1499_v46 = vadd.s32 %v1497_v40, %v1491_v33  ;;  %vm1500_vm10 = vc.u32 %v1498_v19, %v1494_v23 }
 0x1ad   : > { %v1477_v25 = vadd.s32 %v1475_v27, %v1469_v8  ;;  %vm1478_vm11 = vc.u32 %v1476_v12, %v1472_v1  ;;  %v1501_v56 = vsel %vm1500_vm10, 1, %v2148_v63  ;;  %v1493_v48 = vshrl.u32 %v1489_v49, 16 }
 0x1ae   : > { %v1224_v60 = vmul.f32 %v1223_v21, %v1221_v50  ;;  %v1479_v44 = vsel %vm1478_vm11, 1, %v2148_v63  ;;  %v1503_v53 = vadd.s32 %v1501_v56, %v1499_v46  ;;  %v1449_v62 = vsel %vm1445_vm1, %v1429_v41, %v3014_v14 }
 0x1af   : > { %v1451_v6 = vsel %vm1447_vm2, %v3016_v35, %v1450_v39  ;;  %v1471_v15 = vshrl.u32 %v1467_v59, 16  ;;  %v1481_v5 = vadd.s32 %v1479_v44, %v1477_v25  ;;  %v1495_v18 = vshrl.u32 %v1490_v47, 16 }
 0x1b0   : > { %v1225_v42 = vxor.u32 2147483648, %v1224_v60  ;;  %v1504_v17 = vadd.s32 %v1503_v53, %v1493_v48  ;;  %v1228_v63 = vsel %vm1105_vm6, %v1227_v52, %v2991_v7  ;;  %v1473_v22 = vshrl.u32 %v1468_v28, 16 }
 0x1b1   : > { %v1482_v36 = vadd.s32 %v1481_v5, %v1471_v15  ;;  %v1452_v14 = vsel %vm1446_vm5, %v1449_v62, %v1451_v6  ;;  %v1502_v35 = vadd.s32 %v1498_v19, %v1494_v23  ;;  %v1230_v31 = vsel %vm3059_vm4, 0, %v1228_v63 }
 0x1b2   : > { %v1226_v37 = vsel %vm1105_vm6, %v1225_v42, %v1224_v60  ;;  %v1505_v16 = vadd.s32 %v1504_v17, %v1495_v18  ;;  %v1506_v24 = vmul.u32 %v3022_v13, %v1452_v14  ;;  %v1247_v3 = vadd.s32 3, %v1230_v31 }
 0x1b3   : > { %v1229_v57 = vsel %vm3059_vm4, %v2764_v45, %v1226_v37  ;;  %v1483_v58 = vadd.s32 %v1482_v36, %v1473_v22  ;;  %vm1246_vm14 = vweird.f32 %v2764_v45  ;;  %vm1415_vm3 = vcmp.lt.s32.totalorder %v2972_v2, 0 }
 0x1b4   : > { %v1231_v29 = vmul.f32 %v1229_v57, %v1229_v57  ;;  %v1509_v61 = vadd.s32 1, %v1505_v16  ;;  %v1248_v41 = vand.u32 3, %v1247_v3  ;;  %vm1414_vm5 = vcmp.le.f32.partialorder %v1413_v51, 0.7853982 }
 0x1b5   : > { %vm1508_vm12 = vc.u32 %v1483_v58, %v1502_v35  ;;  %v1507_v1 = vadd.s32 %v1502_v35, %v1483_v58  ;;  %vm1556_vm8 = vweird.f32 %v2972_v2 }
 0x1b6   : > { %v1232_v34 = vmul.f32 -0.001358992, %v1231_v29  ;;  %v1239_v0 = vmul.f32 -0.00019511016, %v1231_v29  ;;  %v1510_v20 = vsel %vm1508_vm12, %v1509_v61, %v1505_v16  ;;  %vm1250_vm13 = vcmp.eq.s32.totalorder %v1248_v41, 0 }
 0x1b7   : > { %v1511_v49 = vadd.s32 %v1510_v20, %v1506_v24  ;;  %vm1253_vm15 = vcmp.eq.s32.totalorder %v1248_v41, 2  ;;  %vm1249_vm0 = vcmp.lt.s32.totalorder %v1248_v41, 2 }
 0x1b8   : > { %v1233_v30 = vadd.f32 0.041655596, %v1232_v34  ;;  %v1240_v11 = vadd.f32 0.008332121, %v1239_v0 }
 0x1b9   : > { %v1512_v21 = vadd.s32 536870912, %v1511_v49 }
 0x1ba   : > { %v1234_v26 = vmul.f32 %v1233_v30, %v1231_v29  ;;  %v1241_v4 = vmul.f32 %v1240_v11, %v1231_v29 }
 0x1bb   : > { %v1513_v59 = vshrl.u32 %v1512_v21, 30 }
 0x1bc   : > { %v1235_v7 = vadd.f32 -0.4999988, %v1234_v26  ;;  %v1242_v54 = vadd.f32 -0.16666654, %v1241_v4 }
 0x1bd   : > { %v1514_v60 = vshll.u32 %v1513_v59, 30  ;;  %v1537_v62 = vsub.s32 4, %v1513_v59 }
 0x1be   : > { %v1236_v50 = vmul.f32 %v1235_v7, %v1231_v29  ;;  %v1243_v9 = vmul.f32 %v1242_v54, %v1231_v29 }
 0x1bf   : > { %v1515_v13 = vsub.s32 %v1511_v49, %v1514_v60  ;;  %v1538_v0 = vsel %vm1415_vm3, %v1537_v62, %v1513_v59 }
 0x1c0   : > { %v1237_v47 = vadd.f32 1.0, %v1236_v50  ;;  %v1244_v52 = vadd.f32 1.0, %v1243_v9  ;;  %v1540_v63 = vsel %vm1414_vm5, 0, %v1538_v0 }
 0x1c1   : > { %vm1516_vm1 = vcmp.lt.s32.totalorder %v1515_v13, 0  ;;  %v1517_v8 = vsub.s32 0, %v1515_v13  ;;  %v1557_v14 = vadd.s32 3, %v1540_v63 }
 0x1c2   : > { %v1245_v10 = vmul.f32 %v1244_v52, %v1229_v57  ;;  %v1254_v28 = vxor.u32 2147483648, %v1237_v47 }
 0x1c3   : > { %v1518_v33 = vsel %vm1516_vm1, %v1517_v8, %v1515_v13  ;;  %v1558_v31 = vand.u32 3, %v1557_v14 }
 0x1c4   : > { %v1251_v39 = vxor.u32 2147483648, %v1245_v10  ;;  %v1255_v55 = vsel %vm1253_vm15, %v1254_v28, %v1245_v10  ;;  %v1519_v42 = vclz %v1518_v33 }
 0x1c5   : > { %vm1560_vm6 = vcmp.eq.s32.totalorder %v1558_v31, 0  ;;  %vm1563_vm4 = vcmp.eq.s32.totalorder %v1558_v31, 2  ;;  %vm1559_vm7 = vcmp.lt.s32.totalorder %v1558_v31, 2 }
 0x1c6   : > { %v1252_v38 = vsel %vm1250_vm13, %v1237_v47, %v1251_v39  ;;  %v1900_v23 = vadd.s32 4294967294, %v1519_v42 }
 0x1c7   : > { %v1256_v43 = vsel %vm1249_vm0, %v1252_v38, %v1255_v55 }
 0x1c8   : > { %v1257_v32 = vsel %vm1246_vm14, nan, %v1256_v43  ;;  %vm1901_vm2 = vcmp.lt.s32.totalorder %v1900_v23, 0 }
 0x1c9   : > { %1574 = vst.msk [vmem:[%s2561_s8 + $0x28] sm:$0xff] %vm1568_vm9, %v1257_v32  ;;  %v1522_v19 = vsel %vm1901_vm2, 0, %v1900_v23 }
 0x1ca   : > { %v1523_v12 = vsub.s32 32, %v1522_v19  ;;  %v1527_v40 = vsub.s32 4294967266, %v1522_v19  ;;  %v1524_v37 = vshll.u32 %v1515_v13, %v1522_v19 }
 0x1cc   : > { %v1525_v27 = vshrl.u32 %v1507_v1, %v1523_v12  ;;  %v1528_v46 = vadd.s32 127, %v1527_v40 }
 0x1ce   : > { %v1526_v57 = vor.u32 %v1525_v27, %v1524_v37  ;;  %v1529_v25 = vshll.u32 %v1528_v46, 23 }
 0x1d0   : > { %v1530_v45 = vor.u32 4788187, %v1529_v25  ;;  %v1533_v29 = vcvt.s32.f32 %v1526_v57 }
 0x1d2   : > { %v1531_v56 = vand.u32 2147483647, %v1530_v45 }
 0x1d4   : > { %v1534_v44 = vmul.f32 %v1533_v29, %v1531_v56 }
 0x1d6   : > { %v1535_v48 = vxor.u32 2147483648, %v1534_v44 }
 0x1d8   : > { %v1536_v53 = vsel %vm1415_vm3, %v1535_v48, %v1534_v44 }
 0x1d9   : > { %v1539_v6 = vsel %vm1414_vm5, %v2972_v2, %v1536_v53 }
 0x1da   : > { %v1541_v15 = vmul.f32 %v1539_v6, %v1539_v6 }
 0x1dc   : > { %v1542_v5 = vmul.f32 -0.001358992, %v1541_v15  ;;  %v1549_v34 = vmul.f32 -0.00019511016, %v1541_v15 }
 0x1de   : > { %v1543_v18 = vadd.f32 0.041655596, %v1542_v5  ;;  %v1550_v17 = vadd.f32 0.008332121, %v1549_v34 }
 0x1e0   : > { %v1544_v22 = vmul.f32 %v1543_v18, %v1541_v15  ;;  %v1551_v36 = vmul.f32 %v1550_v17, %v1541_v15 }
 0x1e2   : > { %v1545_v30 = vadd.f32 -0.4999988, %v1544_v22  ;;  %v1552_v11 = vadd.f32 -0.16666654, %v1551_v36 }
 0x1e4   : > { %v1546_v16 = vmul.f32 %v1545_v30, %v1541_v15  ;;  %v1553_v58 = vmul.f32 %v1552_v11, %v1541_v15 }
 0x1e6   : > { %v1547_v51 = vadd.f32 1.0, %v1546_v16  ;;  %v1554_v35 = vadd.f32 1.0, %v1553_v58 }
 0x1e8   : > { %v1555_v26 = vmul.f32 %v1554_v35, %v1539_v6  ;;  %v1564_v4 = vxor.u32 2147483648, %v1547_v51 }
 0x1ea   : > { %v1561_v61 = vxor.u32 2147483648, %v1555_v26  ;;  %v1565_v7 = vsel %vm1563_vm4, %v1564_v4, %v1555_v26 }
 0x1eb   : > { %1583 = sbr.rel (!%p2201_p3) target bundleno = 538 (0x21a), region = 36 }
 0x1ec   : > { %v1562_v24 = vsel %vm1560_vm6, %v1547_v51, %v1561_v61 }
 0x1ed   : > { %v1566_v54 = vsel %vm1559_vm7, %v1562_v24, %v1565_v7 }
 0x1ee   : > { %v1567_v20 = vsel %vm1556_vm8, nan, %v1566_v54 }
 0x1ef   : > { %1576 = vst.msk [vmem:[%s2561_s8 + $0x38] sm:$0xff] %vm1568_vm9, %v1567_v20 }
 0x1f0   : > { %s3195_s11 = smov (!%p1586_p9, %s1585_s11), 8 }
 0x1f1   : > { %s1904_s23 = sshll.u32 %s3195_s11, 3 }
 0x1f2   : > { %p1907_p10 = scmp.eq.s32.totalorder %s1904_s23, 0 }
 0x1f3   : > { %s3114_s24 = sshrl.u32 (!%p1907_p10), %s3195_s11, 3 }
 0x1f4   : > { %1595 = sbr.rel (%p1907_p10) target bundleno = 538 (0x21a), region = 40  ;;  %p1908_p11 = scmp.le.s32.totalorder (!%p1907_p10), %s3114_s24, 0 }
 0x1f9   : > { %1789 = sbr.rel (%p1908_p11) target bundleno = 521 (0x209), region = 122  ;;  %s3184_s14 = smov (!%p1908_p11), %s3108_s21 }
 0x1fa   : > { %s3185_s20 = smov (!%p1908_p11), %s2561_s8  ;;  %s3123_s25 = smov (!%p1908_p11), 0  }
 0x1fb   : > { %s3125_s26 = smov (!%p1908_p11), 0  }
 0x1fe LB: >> { %v1672_v2 = vld [vmem:[%s2116_s20] sm:$0xff]  ;;  %v1674_v3 = vld [vmem:[%s2116_s20 + $0x8] sm:$0xff]  ;;  %v1676_v49 = vld [vmem:[%s2116_s20 + $0x10] sm:$0xff]  ;;  %s1688_s27 = sadd.s32 1, %s2120_s25  ;;  %s1666_s26 = sadd.s32 1, %s2124_s26   ;;  %s2124_s26 = sphi %s3125_s26, %s1666_s26   ;;  %s2120_s25 = sphi %s3123_s25, %s3187_s25   ;;  %s2116_s20 = sphi %s3185_s20, %s1693_s20   ;;  %s2112_s14 = sphi %s3184_s14, %s3186_s14  }
 0x1ff   : >> { %1673 = vst [vmem:[%s2112_s14] sm:$0xff] %v1672_v2  ;;  %v1678_v50 = vld [vmem:[%s2116_s20 + $0x18] sm:$0xff]  ;;  %p1689_p12 = scmp.ge.s32.totalorder %s1688_s27, %s3114_s24  ;;  %v1680_v9 = vld [vmem:[%s2116_s20 + $0x20] sm:$0xff]  ;;  %v1682_v21 = vld [vmem:[%s2116_s20 + $0x28] sm:$0xff]  ;;  %p1665_p13 = scmp.ge.s32.totalorder %s1666_s26, %s3114_s24 }
 0x200   : >> { %1675 = vst [vmem:[%s2112_s14 + $0x8] sm:$0xff] %v1674_v3  ;;  %v1684_v47 = vld [vmem:[%s2116_s20 + $0x30] sm:$0xff]  ;;  %v1686_v52 = vld [vmem:[%s2116_s20 + $0x38] sm:$0xff] }
 0x201   : >> { %1677 = vst [vmem:[%s2112_s14 + $0x10] sm:$0xff] %v1676_v49  ;;  %s3197_s27 = smov (%p1689_p12, %s1688_s27), 0 }
 0x202   : >> { %1679 = vst [vmem:[%s2112_s14 + $0x18] sm:$0xff] %v1678_v50  ;;  %s1909_s28 = sshll.u32 %s3197_s27, 6  ;;  %s3187_s25 = smov %s3197_s27 }
 0x203   : >> { %1681 = vst [vmem:[%s2112_s14 + $0x20] sm:$0xff] %v1680_v9  ;;  %s1693_s20 = scalar_lea.vmem %s2561_s8, %s1909_s28 [#allocation2]   ;;  %s1694_s29 = scalar_lea.vmem %s3108_s21, %s1909_s28  }
 0x204   : >> { %1683 = vst [vmem:[%s2112_s14 + $0x28] sm:$0xff] %v1682_v21  ;;  %1668 = sbr.rel (!%p1665_p13) target bundleno = 510 (0x1fe), region = 128 }
 0x205   : >> { %1685 = vst [vmem:[%s2112_s14 + $0x30] sm:$0xff] %v1684_v47 }
 0x206   : >> { %1687 = vst [vmem:[%s2112_s14 + $0x38] sm:$0xff] %v1686_v52  ;;  %s3186_s14 = smov %s1694_s29 }
 0x209 PF: > { %s3144_s30 = sand.u32 7, %s3195_s11   ;;  %s1920_s4 = sshll.u32 %s3114_s24, 6 }
 0x20a   : > { %s1699_s5 = scalar_lea.vmem %s2561_s8, %s1920_s4 [#allocation2]   ;;  %s1701_s6 = scalar_lea.vmem %s3108_s21, %s1920_s4  }
 0x20b   : > { %p1914_p0 = scmp.le.s32.totalorder %s3144_s30, 0 }
 0x20c   : > { %s2126_s7 = smov (!%p1914_p0), %s1701_s6   ;;  %s2130_s9 = smov (!%p1914_p0), %s1699_s5  }
 0x20d   : > { %1803 = sbr.rel (%p1914_p0) target bundleno = 538 (0x21a), region = 133  ;;  %s2134_s10 = smov (!%p1914_p0), 0  }
 0x20e   : > { %s2138_s12 = smov (!%p1914_p0), 0  }
 0x212 LB: >> { %v1711_v41 = vld [vmem:[%s2132_s9] sm:$0xff]  ;;  %s1713_s11 = sadd.s32 1, %s2136_s10  ;;  %s1705_s12 = sadd.s32 1, %s2140_s12   ;;  %s2140_s12 = sphi %s2138_s12, %s1705_s12   ;;  %s2136_s10 = sphi %s2134_s10, %s2135_s10   ;;  %s2132_s9 = sphi %s2130_s9, %s1718_s9   ;;  %s2128_s7 = sphi %s2126_s7, %s1719_s7  }
 0x213   : >> { %1712 = vst [vmem:[%s2128_s7] sm:$0xff] %v1711_v41  ;;  %p1714_p1 = scmp.ge.s32.totalorder %s1713_s11, %s3144_s30  ;;  %p1704_p2 = scmp.ge.s32.totalorder %s1705_s12, %s3144_s30 }
 0x215   : >> { %s3199_s11 = smov (%p1714_p1, %s1713_s11), 0  ;;  %1707 = sbr.rel (!%p1704_p2) target bundleno = 530 (0x212), region = 139 }
 0x216   : >> { %s1915_s8 = sshll.u32 %s3199_s11, 3  ;;  %s2135_s10 = smov %s3199_s11  }
 0x217   : >> { %s1718_s9 = scalar_lea.vmem %s1699_s5, %s1915_s8 [#allocation2]   ;;  %s1719_s7 = scalar_lea.vmem %s1701_s6, %s1915_s8  }
 0x21a PF: > { %s13_s16 = sadd.s32 1, %s2108_s16   ;;  %s3188_s12 = smov %s2096_s13 }
 0x21b   : > { %p10_p3 = scmp.ge.s32.totalorder %s13_s16, 6   ;;  %s3189_s13 = smov %s2210_s22 }
 0x21c   : > { %s3190_s14 = smov %s2104_s15  ;;  %s3191_s15 = smov %s3193_s18 }
 0x21d   :  { %12 = sbr.rel (!%p10_p3) target bundleno = 3 (0x3), region = 150 }

</bundles_post_ra>
